<compile_context>
chip_gen: v5e
topology: v5e:2x2
jax: 0.10.0
libtpu: 0.0.40
codegen_flags: <defaults>
</compile_context>

<pallas_src>
import jax
import jax.numpy as jnp
from jax.experimental import pallas as pl
from jax.experimental.pallas import tpu as pltpu

D_H1 = 256          # 200 padded to a lane multiple
D_H2 = 256          # 200 padded
D_H3 = 384          # 300 padded
LANE = 128
MAX_TB = 2048       # batch-tile (lane) width once the batch gets large
SMALL_BATCH_XLA_CUTOFF = 256


def _pad2(x, rows, cols):
    r, c = x.shape
    return jnp.pad(x, ((0, rows - r), (0, cols - c)))


def mlp_kernel(x_ref, w1_ref, b1_ref, w2_ref, b2_ref, w3_ref, b3_ref,
               w4_ref, b4_ref, o_ref):
    # Transposed ("batch on the lane axis") layout: activations are (D, TB).
    x = x_ref[...]                                            # (1, TB)   f32

    # Layer 1: in_features == 1 -> VPU broadcast outer product (no MXU pass).
    h = jnp.maximum(w1_ref[...] * x + b1_ref[...], 0.0)       # (256, TB) f32

    # Layers 2 & 3: stationary (out, in) weights on the MXU, bf16 in, f32 acc.
    h = jnp.maximum(
        jnp.dot(w2_ref[...], h.astype(jnp.bfloat16),
                preferred_element_type=jnp.float32) + b2_ref[...], 0.0)   # (256, TB)
    h = jnp.maximum(
        jnp.dot(w3_ref[...], h.astype(jnp.bfloat16),
                preferred_element_type=jnp.float32) + b3_ref[...], 0.0)   # (384, TB)

    # Layer 4: out_features == 1 -> VPU multiply + sublane (XLU) reduce, f32.
    o_ref[...] = (jnp.sum(h * w4_ref[...], axis=0, keepdims=True)
                  + b4_ref[...])                              # (1, TB)   f32


def prepare_params(params):
    """Pad + cast the Linear weights ONCE (hoisted out of the per-call path).

    `params` holds (in_features, out_features) weights (== PyTorch weight.T).
    For the lane-dense (transposed) kernel we store weights as
    (out_padded, in_padded) and biases as (out_padded, 1) columns.
    MXU layers (2, 3) are bf16; VPU layers (1, 4) and all biases stay f32.
    """
    (w1, b1), (w2, b2), (w3, b3), (w4, b4) = params
    w1_p = _pad2(w1.T, D_H1, 1).astype(jnp.float32)            # (256, 1)
    b1_p = _pad2(b1[:, None], D_H1, 1).astype(jnp.float32)     # (256, 1)
    w2_p = _pad2(w2.T, D_H2, D_H1).astype(jnp.bfloat16)        # (256, 256)
    b2_p = _pad2(b2[:, None], D_H2, 1).astype(jnp.float32)     # (256, 1)
    w3_p = _pad2(w3.T, D_H3, D_H2).astype(jnp.bfloat16)        # (384, 256)
    b3_p = _pad2(b3[:, None], D_H3, 1).astype(jnp.float32)     # (384, 1)
    w4_p = _pad2(w4, D_H3, 1).astype(jnp.float32)              # (384, 1)
    b4_p = b4.reshape(1, 1).astype(jnp.float32)                # (1, 1)
    return (w1_p, b1_p, w2_p, b2_p, w3_p, b3_p, w4_p, b4_p)


def regression_forward(x, padded_params):
    """x: (B, 1) float32 -> (B, 1) float32 prediction. Call under jax.jit."""
    w1_p, b1_p, w2_p, b2_p, w3_p, b3_p, w4_p, b4_p = padded_params
    B = x.shape[0]

    # Batch padding / tiling: small batches run as a single lane-dense block;
    # large batches stream MAX_TB-column tiles over a parallel grid (>= 2 steps
    # whenever B > MAX_TB, so v7x can use both TensorCores).
    if B <= MAX_TB:
        Bp = max(LANE, ((B + LANE - 1) // LANE) * LANE)
        TB = Bp
    else:
        TB = MAX_TB
        Bp = ((B + TB - 1) // TB) * TB
    grid = (Bp // TB,)

    # Lane-dense input: the batch lives on the 128-wide lane axis.
    x_row = jnp.pad(x.astype(jnp.float32).reshape(1, B), ((0, 0), (0, Bp - B)))

    batch_spec = pl.BlockSpec((1, TB), lambda i: (0, i))
    resident = lambda shape: pl.BlockSpec(shape, lambda i: (0, 0))

    flops = 2 * Bp * (D_H1 * D_H2 + D_H2 * D_H3 + D_H1 + D_H3)
    bytes_accessed = (
        2 * 4 * Bp                                   # x in + y out (f32)
        + 2 * (D_H1 * D_H2 + D_H2 * D_H3)            # bf16 matmul weights
        + 4 * (2 * D_H1 + D_H2 + 2 * D_H3 + 1)       # f32 w1/b1/b2/b3/w4/b4
    )

    out_row = pl.pallas_call(
        mlp_kernel,
        out_shape=jax.ShapeDtypeStruct((1, Bp), jnp.float32),
        grid=grid,
        in_specs=[
            batch_spec,                                   # x (1, TB)
            resident((D_H1, 1)), resident((D_H1, 1)),     # w1, b1
            resident((D_H2, D_H1)), resident((D_H2, 1)),  # w2, b2
            resident((D_H3, D_H2)), resident((D_H3, 1)),  # w3, b3
            resident((D_H3, 1)), resident((1, 1)),        # w4, b4
        ],
        out_specs=batch_spec,
        compiler_params=pltpu.CompilerParams(
            dimension_semantics=("parallel",),
            vmem_limit_bytes=32 * 1024 * 1024),
        cost_estimate=pl.CostEstimate(flops=flops, transcendentals=0,
                                      bytes_accessed=bytes_accessed),
    )(x_row, w1_p, b1_p, w2_p, b2_p, w3_p, b3_p, w4_p, b4_p)

    return out_row[0, :B].reshape(B, 1)


def regression_forward_auto(x, params, padded_params):
    """Dispatcher: tiny batches are pure launch overhead -> plain XLA path."""
    if x.shape[0] <= SMALL_BATCH_XLA_CUTOFF:
        return reference_forward(x, params)
    return regression_forward(x, padded_params)


def init_params(key):
    """Deterministic Kaiming-uniform-ish init matching the Linear shapes.
    Weights stored as (in_features, out_features) = PyTorch weight.T."""
    sizes = [(1, 200), (200, 200), (200, 300), (300, 1)]
    params = []
    for (fan_in, fan_out) in sizes:
        key, kw, kb = jax.random.split(key, 3)
        bound = 1.0 / jnp.sqrt(fan_in)
        w = jax.random.uniform(kw, (fan_in, fan_out), jnp.float32, -bound, bound)
        b = jax.random.uniform(kb, (fan_out,), jnp.float32, -bound, bound)
        params.append((w, b))
    return params


def reference_forward(x, params):
    """Pure f32 reference matching the PyTorch forward semantics."""
    h = x
    for i, (w, b) in enumerate(params):
        h = h @ w + b
        if i < len(params) - 1:
            h = jnp.maximum(h, 0.0)
    return h


# TODO(synk): get_loss (MSE) and the Adam training loop are not translated;
# this kernel implements only the forward pass of RegressionModel.

if __name__ == "__main__":
    key = jax.random.PRNGKey(0)
    params = init_params(key)
    padded_params = prepare_params(params)   # pad + bf16-cast once, outside hot path

    # batch of scalar inputs in [-2pi, 2pi], shape (batch_size, 1)
    xkey = jax.random.fold_in(key, 42)
    x = jax.random.uniform(xkey, (8, 1), jnp.float32,
                           -2.0 * jnp.pi, 2.0 * jnp.pi)

    fwd = jax.jit(regression_forward)
    y = jax.block_until_ready(fwd(x, padded_params))

    y_ref = reference_forward(x, params)
    assert y.shape == (8, 1)
    # Tolerance loosened vs. the pure-f32 path because layers 2/3 feed bf16
    # into the MXU (f32 accumulation).
    assert jnp.allclose(y, y_ref, atol=5e-2, rtol=5e-2), "mismatch vs reference"
    print("KERNEL_OK")
</pallas_src>

<mosaic_0001>
module attributes {stable_mosaic.version = 11 : i64} {
  func.func @mlp_kernel(%arg0: i32, %arg1: memref<1x128xf32, #tpu.memory_space<vmem>>, %arg2: memref<256x1xf32, #tpu.memory_space<vmem>>, %arg3: memref<256x1xf32, #tpu.memory_space<vmem>>, %arg4: memref<256x256xbf16, #tpu.memory_space<vmem>>, %arg5: memref<256x1xf32, #tpu.memory_space<vmem>>, %arg6: memref<384x256xbf16, #tpu.memory_space<vmem>>, %arg7: memref<384x1xf32, #tpu.memory_space<vmem>>, %arg8: memref<384x1xf32, #tpu.memory_space<vmem>>, %arg9: memref<1x1xf32, #tpu.memory_space<vmem>>, %arg10: memref<1x128xf32, #tpu.memory_space<vmem>>) attributes {dimension_semantics = [#tpu.dimension_semantics<parallel>], iteration_bounds = array<i64: 1>, scalar_prefetch = 0 : i64, scratch_operands = 0 : i64, tpu.core_type = #tpu.core_type<tc>, window_params = [{transform_indices = @transform_0, window_bounds = array<i64: 1, 128>}, {pipeline_mode = #tpu.pipeline_mode<synchronous>, transform_indices = @transform_1, window_bounds = array<i64: 256, 1>}, {pipeline_mode = #tpu.pipeline_mode<synchronous>, transform_indices = @transform_2, window_bounds = array<i64: 256, 1>}, {pipeline_mode = #tpu.pipeline_mode<synchronous>, transform_indices = @transform_3, window_bounds = array<i64: 256, 256>}, {pipeline_mode = #tpu.pipeline_mode<synchronous>, transform_indices = @transform_4, window_bounds = array<i64: 256, 1>}, {pipeline_mode = #tpu.pipeline_mode<synchronous>, transform_indices = @transform_5, window_bounds = array<i64: 384, 256>}, {pipeline_mode = #tpu.pipeline_mode<synchronous>, transform_indices = @transform_6, window_bounds = array<i64: 384, 1>}, {pipeline_mode = #tpu.pipeline_mode<synchronous>, transform_indices = @transform_7, window_bounds = array<i64: 384, 1>}, {pipeline_mode = #tpu.pipeline_mode<synchronous>, transform_indices = @transform_8, window_bounds = array<i64: 1, 1>}, {transform_indices = @transform_9, window_bounds = array<i64: 1, 128>}]} {
    %c0 = arith.constant 0 : index
    %c0_0 = arith.constant 0 : index
    %0 = vector.load %arg1[%c0, %c0_0] : memref<1x128xf32, #tpu.memory_space<vmem>>, vector<1x128xf32>
    %c0_1 = arith.constant 0 : index
    %c0_2 = arith.constant 0 : index
    %1 = vector.load %arg2[%c0_1, %c0_2] : memref<256x1xf32, #tpu.memory_space<vmem>>, vector<256x1xf32>
    %2 = vector.broadcast %1 : vector<256x1xf32> to vector<256x128xf32>
    %3 = vector.broadcast %0 : vector<1x128xf32> to vector<256x128xf32>
    %4 = arith.mulf %2, %3 : vector<256x128xf32>
    %c0_3 = arith.constant 0 : index
    %c0_4 = arith.constant 0 : index
    %5 = vector.load %arg3[%c0_3, %c0_4] : memref<256x1xf32, #tpu.memory_space<vmem>>, vector<256x1xf32>
    %6 = vector.broadcast %5 : vector<256x1xf32> to vector<256x128xf32>
    %7 = arith.addf %4, %6 : vector<256x128xf32>
    %cst = arith.constant 0.000000e+00 : f32
    %8 = vector.broadcast %cst : f32 to vector<256x128xf32>
    %9 = arith.maximumf %7, %8 : vector<256x128xf32>
    %c0_5 = arith.constant 0 : index
    %c0_6 = arith.constant 0 : index
    %10 = vector.load %arg4[%c0_5, %c0_6] : memref<256x256xbf16, #tpu.memory_space<vmem>>, vector<256x256xbf16>
    %11 = arith.truncf %9 : vector<256x128xf32> to vector<256x128xbf16>
    %cst_7 = arith.constant dense<0.000000e+00> : vector<256x128xf32>
    %12 = tpu.matmul %10, %11, %cst_7 {dimension_numbers = #tpu.dot_dimension_numbers<[1], [0], [0], [1], [0, 0, 1, 1], [], []>} : vector<256x256xbf16>, vector<256x128xbf16>, vector<256x128xf32> -> vector<256x128xf32>
    %c0_8 = arith.constant 0 : index
    %c0_9 = arith.constant 0 : index
    %13 = vector.load %arg5[%c0_8, %c0_9] : memref<256x1xf32, #tpu.memory_space<vmem>>, vector<256x1xf32>
    %14 = vector.broadcast %13 : vector<256x1xf32> to vector<256x128xf32>
    %15 = arith.addf %12, %14 : vector<256x128xf32>
    %cst_10 = arith.constant 0.000000e+00 : f32
    %16 = vector.broadcast %cst_10 : f32 to vector<256x128xf32>
    %17 = arith.maximumf %15, %16 : vector<256x128xf32>
    %c0_11 = arith.constant 0 : index
    %c0_12 = arith.constant 0 : index
    %18 = vector.load %arg6[%c0_11, %c0_12] : memref<384x256xbf16, #tpu.memory_space<vmem>>, vector<384x256xbf16>
    %19 = arith.truncf %17 : vector<256x128xf32> to vector<256x128xbf16>
    %cst_13 = arith.constant dense<0.000000e+00> : vector<384x128xf32>
    %20 = tpu.matmul %18, %19, %cst_13 {dimension_numbers = #tpu.dot_dimension_numbers<[1], [0], [0], [1], [0, 0, 1, 1], [], []>} : vector<384x256xbf16>, vector<256x128xbf16>, vector<384x128xf32> -> vector<384x128xf32>
    %c0_14 = arith.constant 0 : index
    %c0_15 = arith.constant 0 : index
    %21 = vector.load %arg7[%c0_14, %c0_15] : memref<384x1xf32, #tpu.memory_space<vmem>>, vector<384x1xf32>
    %22 = vector.broadcast %21 : vector<384x1xf32> to vector<384x128xf32>
    %23 = arith.addf %20, %22 : vector<384x128xf32>
    %cst_16 = arith.constant 0.000000e+00 : f32
    %24 = vector.broadcast %cst_16 : f32 to vector<384x128xf32>
    %25 = arith.maximumf %23, %24 : vector<384x128xf32>
    %c0_17 = arith.constant 0 : index
    %c0_18 = arith.constant 0 : index
    %26 = vector.load %arg8[%c0_17, %c0_18] : memref<384x1xf32, #tpu.memory_space<vmem>>, vector<384x1xf32>
    %27 = vector.broadcast %26 : vector<384x1xf32> to vector<384x128xf32>
    %28 = arith.mulf %25, %27 : vector<384x128xf32>
    %cst_19 = arith.constant dense<0.000000e+00> : vector<128xf32>
    %29 = vector.multi_reduction <add>, %28, %cst_19 [0] : vector<384x128xf32> to vector<128xf32>
    %30 = vector.shape_cast %29 : vector<128xf32> to vector<1x128xf32>
    %c0_20 = arith.constant 0 : index
    %c0_21 = arith.constant 0 : index
    %31 = vector.load %arg9[%c0_20, %c0_21] : memref<1x1xf32, #tpu.memory_space<vmem>>, vector<1x1xf32>
    %32 = vector.broadcast %31 : vector<1x1xf32> to vector<1x128xf32>
    %33 = arith.addf %30, %32 : vector<1x128xf32>
    %c0_22 = arith.constant 0 : index
    %c0_23 = arith.constant 0 : index
    %34 = vector.load %arg10[%c0_22, %c0_23] : memref<1x128xf32, #tpu.memory_space<vmem>>, vector<1x128xf32>
    tpu.vector_store %arg10[%c0_22, %c0_23], %33 {strides = array<i32>} : memref<1x128xf32, #tpu.memory_space<vmem>>, vector<1x128xf32>,
    return
  }
  func.func @transform_0(%arg0: i32) -> (i32, i32) {
    %c0_i32 = arith.constant 0 : i32
    %c0_i32_0 = arith.constant 0 : i32
    return %c0_i32, %arg0 : i32, i32
  }
  func.func @transform_1(%arg0: i32) -> (i32, i32) {
    %c0_i32 = arith.constant 0 : i32
    %c0_i32_0 = arith.constant 0 : i32
    %c0_i32_1 = arith.constant 0 : i32
    return %c0_i32, %c0_i32_0 : i32, i32
  }
  func.func @transform_2(%arg0: i32) -> (i32, i32) {
    %c0_i32 = arith.constant 0 : i32
    %c0_i32_0 = arith.constant 0 : i32
    %c0_i32_1 = arith.constant 0 : i32
    return %c0_i32, %c0_i32_0 : i32, i32
  }
  func.func @transform_3(%arg0: i32) -> (i32, i32) {
    %c0_i32 = arith.constant 0 : i32
    %c0_i32_0 = arith.constant 0 : i32
    %c0_i32_1 = arith.constant 0 : i32
    return %c0_i32, %c0_i32_0 : i32, i32
  }
  func.func @transform_4(%arg0: i32) -> (i32, i32) {
    %c0_i32 = arith.constant 0 : i32
    %c0_i32_0 = arith.constant 0 : i32
    %c0_i32_1 = arith.constant 0 : i32
    return %c0_i32, %c0_i32_0 : i32, i32
  }
  func.func @transform_5(%arg0: i32) -> (i32, i32) {
    %c0_i32 = arith.constant 0 : i32
    %c0_i32_0 = arith.constant 0 : i32
    %c0_i32_1 = arith.constant 0 : i32
    return %c0_i32, %c0_i32_0 : i32, i32
  }
  func.func @transform_6(%arg0: i32) -> (i32, i32) {
    %c0_i32 = arith.constant 0 : i32
    %c0_i32_0 = arith.constant 0 : i32
    %c0_i32_1 = arith.constant 0 : i32
    return %c0_i32, %c0_i32_0 : i32, i32
  }
  func.func @transform_7(%arg0: i32) -> (i32, i32) {
    %c0_i32 = arith.constant 0 : i32
    %c0_i32_0 = arith.constant 0 : i32
    %c0_i32_1 = arith.constant 0 : i32
    return %c0_i32, %c0_i32_0 : i32, i32
  }
  func.func @transform_8(%arg0: i32) -> (i32, i32) {
    %c0_i32 = arith.constant 0 : i32
    %c0_i32_0 = arith.constant 0 : i32
    %c0_i32_1 = arith.constant 0 : i32
    return %c0_i32, %c0_i32_0 : i32, i32
  }
  func.func @transform_9(%arg0: i32) -> (i32, i32) {
    %c0_i32 = arith.constant 0 : i32
    %c0_i32_0 = arith.constant 0 : i32
    return %c0_i32, %arg0 : i32, i32
  }
}

</mosaic_0001>

<bundles_post_ra>
// kernel: regression_forward.1
= control target key start
LH: loop header
LB: loop body
LE: loop exit
PB: predicated region body
PF: predicated region fallthrough
CT: control target
= control target key end

     0   :  { %v2849_v0 = vmov 0   ;;  %s4358_s1 = inlined_call_operand.vmem [shape: f32[256,1], index: 1, kind: input, shape index: {}]   ;;  %s4359_s0 = inlined_call_operand.vmem [shape: f32[1,128], index: 0, kind: input, shape index: {}]   ;;  %s4360_s2 = inlined_call_operand.vmem [shape: f32[256,1], index: 2, kind: input, shape index: {}]   ;;  %s4361_s4 = inlined_call_operand.vmem [shape: f32[256,1], index: 4, kind: input, shape index: {}]   ;;  %s4362_s6 = inlined_call_operand.vmem [shape: f32[384,1], index: 6, kind: input, shape index: {}]   ;;  %s4363_s3 = inlined_call_operand.vmem [shape: bf16[256,256], index: 3, kind: input, shape index: {}]   ;;  %s4364_s7 = inlined_call_operand.vmem [shape: f32[384,1], index: 7, kind: input, shape index: {}]   ;;  %s4365_s8 = inlined_call_operand.<no memory space> [shape: f32[1,1], index: 8, kind: input, shape index: {}]   ;;  %s4366_s5 = inlined_call_operand.vmem [shape: bf16[384,256], index: 5, kind: input, shape index: {}]   ;;  %s4367_s9 = inlined_call_operand.vmem [shape: f32[1,128], index: 9, kind: output, shape index: {}]  }
   0x1   :  { %2847 = vset.pattern.permute.xlu2 %v2849_v0  ;;  %2846 = vset.pattern.permute.xlu1 %v2849_v0  ;;  %v39_v1 = vld [vmem:[%s4358_s1 + $0x20] sm:$0xff]  ;;  %v37_v2 = vld [vmem:[%s4358_s1 + $0x10] sm:$0xff]  ;;  %v40_v4 = vld [vmem:[%s4358_s1 + $0x28] sm:$0xff] }
   0x2   :  { %v35_v3 = vld [vmem:[%s4358_s1] sm:$0xff]  ;;  %2845 = vset.pattern.permute.xlu0 %v2849_v0  ;;  %89 = vperm.xlu2 %2847, %v39_v1   ;;  %v38_v5 = vld [vmem:[%s4358_s1 + $0x18] sm:$0xff]  ;;  %v36_v6 = vld [vmem:[%s4358_s1 + $0x8] sm:$0xff] }
   0x3   :  { %79 = vperm.xlu1 %2846, %v37_v2   ;;  %69 = vperm.xlu0 %2845, %v35_v3   ;;  %v43_v7 = vld [vmem:[%s4358_s1 + $0x40] sm:$0xff]  ;;  %v42_v8 = vld [vmem:[%s4358_s1 + $0x38] sm:$0xff]  ;;  %v41_v9 = vld [vmem:[%s4358_s1 + $0x30] sm:$0xff] }
   0x4   :  { %v46_v10 = vld [vmem:[%s4358_s1 + $0x58] sm:$0xff]  ;;  %v45_v11 = vld [vmem:[%s4358_s1 + $0x50] sm:$0xff]  ;;  %v44_v12 = vld [vmem:[%s4358_s1 + $0x48] sm:$0xff] }
   0x5   :  { %v49_v13 = vld [vmem:[%s4358_s1 + $0x70] sm:$0xff]  ;;  %v48_v14 = vld [vmem:[%s4358_s1 + $0x68] sm:$0xff]  ;;  %v47_v15 = vld [vmem:[%s4358_s1 + $0x60] sm:$0xff] }
   0x6   :  { %v52_v16 = vld [vmem:[%s4358_s1 + $0x88] sm:$0xff]  ;;  %v51_v17 = vld [vmem:[%s4358_s1 + $0x80] sm:$0xff]  ;;  %v50_v18 = vld [vmem:[%s4358_s1 + $0x78] sm:$0xff] }
   0x7   :  { %v55_v19 = vld [vmem:[%s4358_s1 + $0xa0] sm:$0xff]  ;;  %v54_v20 = vld [vmem:[%s4358_s1 + $0x98] sm:$0xff]  ;;  %v53_v21 = vld [vmem:[%s4358_s1 + $0x90] sm:$0xff] }
   0x8   :  { %v58_v22 = vld [vmem:[%s4358_s1 + $0xb8] sm:$0xff]  ;;  %v57_v23 = vld [vmem:[%s4358_s1 + $0xb0] sm:$0xff]  ;;  %v56_v24 = vld [vmem:[%s4358_s1 + $0xa8] sm:$0xff] }
   0x9   :  { %v61_v25 = vld [vmem:[%s4358_s1 + $0xd0] sm:$0xff]  ;;  %v60_v26 = vld [vmem:[%s4358_s1 + $0xc8] sm:$0xff]  ;;  %v59_v27 = vld [vmem:[%s4358_s1 + $0xc0] sm:$0xff] }
   0xa   :  { %94 = vperm.xlu2 %2847, %v40_v4   ;;  %v64_v28 = vld [vmem:[%s4358_s1 + $0xe8] sm:$0xff]  ;;  %v63_v29 = vld [vmem:[%s4358_s1 + $0xe0] sm:$0xff]  ;;  %v62_v30 = vld [vmem:[%s4358_s1 + $0xd8] sm:$0xff] }
   0xb   :  { %84 = vperm.xlu1 %2846, %v38_v5   ;;  %74 = vperm.xlu0 %2845, %v36_v6   ;;  %v262_v31 = vld [vmem:[%s4360_s2] sm:$0xff]  ;;  %v66_v32 = vld [vmem:[%s4358_s1 + $0xf8] sm:$0xff]  ;;  %v65_v33 = vld [vmem:[%s4358_s1 + $0xf0] sm:$0xff] }
   0xc   :  { %v277_v34 = vld [vmem:[%s4360_s2 + $0x78] sm:$0xff]  ;;  %v276_v35 = vld [vmem:[%s4360_s2 + $0x70] sm:$0xff]  ;;  %v263_v36 = vld [vmem:[%s4360_s2 + $0x8] sm:$0xff] }
   0xd   :  { %v274_v38 = vld [vmem:[%s4360_s2 + $0x60] sm:$0xff]  ;;  %v293_v39 = vld [vmem:[%s4360_s2 + $0xf8] sm:$0xff]  ;;  %v292_v40 = vld [vmem:[%s4360_s2 + $0xf0] sm:$0xff] }
   0xe   :  { %v291_v42 = vld [vmem:[%s4360_s2 + $0xe8] sm:$0xff]  ;;  %v290_v43 = vld [vmem:[%s4360_s2 + $0xe0] sm:$0xff]  ;;  %v288_v46 = vld [vmem:[%s4360_s2 + $0xd0] sm:$0xff] }
   0xf   :  { %v275_v44 = vld [vmem:[%s4360_s2 + $0x68] sm:$0xff]  ;;  %v273_v47 = vld [vmem:[%s4360_s2 + $0x58] sm:$0xff]  ;;  %v272_v48 = vld [vmem:[%s4360_s2 + $0x50] sm:$0xff] }
  0x10   :  { %v271_v52 = vld [vmem:[%s4360_s2 + $0x48] sm:$0xff]  ;;  %v270_v53 = vld [vmem:[%s4360_s2 + $0x40] sm:$0xff]  ;;  %v289_v54 = vld [vmem:[%s4360_s2 + $0xd8] sm:$0xff] }
  0x11   :  { %v268_v58 = vld [vmem:[%s4360_s2 + $0x30] sm:$0xff]  ;;  %v287_v59 = vld [vmem:[%s4360_s2 + $0xc8] sm:$0xff]  ;;  %v286_v60 = vld [vmem:[%s4360_s2 + $0xc0] sm:$0xff] }
  0x12   :  { %109 = vperm.xlu2 %2847, %v43_v7   ;;  %v285_v0 = vld [vmem:[%s4360_s2 + $0xb8] sm:$0xff]  ;;  %v284_v1 = vld [vmem:[%s4360_s2 + $0xb0] sm:$0xff]  ;;  %v282_v6 = vld [vmem:[%s4360_s2 + $0xa0] sm:$0xff] }
  0x13   :  { %104 = vperm.xlu1 %2846, %v42_v8   ;;  %99 = vperm.xlu0 %2845, %v41_v9   ;;  %v269_v2 = vld [vmem:[%s4360_s2 + $0x38] sm:$0xff]  ;;  %v267_v7 = vld [vmem:[%s4360_s2 + $0x28] sm:$0xff]  ;;  %v266_v8 = vld [vmem:[%s4360_s2 + $0x20] sm:$0xff] }
  0x1a   :  { %124 = vperm.xlu2 %2847, %v46_v10  }
  0x1b   :  { %119 = vperm.xlu1 %2846, %v45_v11   ;;  %114 = vperm.xlu0 %2845, %v44_v12   ;;  %v265_v12 = vld [vmem:[%s4360_s2 + $0x18] sm:$0xff] }
  0x22   :  { %139 = vperm.xlu2 %2847, %v49_v13   ;;  %v264_v13 = vld [vmem:[%s4360_s2 + $0x10] sm:$0xff] }
  0x23   :  { %134 = vperm.xlu1 %2846, %v48_v14   ;;  %129 = vperm.xlu0 %2845, %v47_v15   ;;  %v283_v14 = vld [vmem:[%s4360_s2 + $0xa8] sm:$0xff] }
  0x2a   :  { %154 = vperm.xlu2 %2847, %v52_v16  }
  0x2b   :  { %149 = vperm.xlu1 %2846, %v51_v17   ;;  %144 = vperm.xlu0 %2845, %v50_v18   ;;  %v278_v18 = vld [vmem:[%s4360_s2 + $0x80] sm:$0xff] }
  0x32   :  { %169 = vperm.xlu2 %2847, %v55_v19   ;;  %v281_v19 = vld [vmem:[%s4360_s2 + $0x98] sm:$0xff] }
  0x33   :  { %164 = vperm.xlu1 %2846, %v54_v20   ;;  %159 = vperm.xlu0 %2845, %v53_v21   ;;  %v280_v20 = vld [vmem:[%s4360_s2 + $0x90] sm:$0xff] }
  0x3a   :  { %184 = vperm.xlu2 %2847, %v58_v22  }
  0x3b   :  { %179 = vperm.xlu1 %2846, %v57_v23   ;;  %174 = vperm.xlu0 %2845, %v56_v24   ;;  %v567_v24 = vld [vmem:[%s4361_s4 + $0x8] sm:$0xff] }
  0x42   :  { %199 = vperm.xlu2 %2847, %v61_v25   ;;  %v566_v25 = vld [vmem:[%s4361_s4] sm:$0xff] }
  0x43   :  { %194 = vperm.xlu1 %2846, %v60_v26   ;;  %189 = vperm.xlu0 %2845, %v59_v27   ;;  %v279_v26 = vld [vmem:[%s4360_s2 + $0x88] sm:$0xff] }
  0x4a   :  { %214 = vperm.xlu2 %2847, %v64_v28  }
  0x4b   :  { %209 = vperm.xlu1 %2846, %v63_v29   ;;  %204 = vperm.xlu0 %2845, %v62_v30   ;;  %v570_v30 = vld [vmem:[%s4361_s4 + $0x20] sm:$0xff] }
  0x52   :  { %296 = vperm.xlu2 %2847, %v262_v31   ;;  %v569_v31 = vld [vmem:[%s4361_s4 + $0x18] sm:$0xff] }
  0x53   :  { %224 = vperm.xlu1 %2846, %v66_v32   ;;  %219 = vperm.xlu0 %2845, %v65_v33   ;;  %v568_v32 = vld [vmem:[%s4361_s4 + $0x10] sm:$0xff] }
  0x5a   :  { %371 = vperm.xlu2 %2847, %v277_v34  }
  0x5b   :  { %366 = vperm.xlu1 %2846, %v276_v35   ;;  %301 = vperm.xlu0 %2845, %v263_v36   ;;  %v573_v35 = vld [vmem:[%s4361_s4 + $0x38] sm:$0xff] }
  0x5c   :  { %v3008_v37 = vpop.permute.xlu2 %89 }
  0x62   :  { %356 = vperm.xlu2 %2847, %v274_v38   ;;  %v572_v38 = vld [vmem:[%s4361_s4 + $0x30] sm:$0xff] }
  0x63   :  { %451 = vperm.xlu1 %2846, %v293_v39   ;;  %446 = vperm.xlu0 %2845, %v292_v40   ;;  %v571_v39 = vld [vmem:[%s4361_s4 + $0x28] sm:$0xff] }
  0x64   :  { %v3019_v41 = vpop.permute.xlu2 %94 }
  0x6a   :  { %441 = vperm.xlu2 %2847, %v291_v42  }
  0x6b   :  { %436 = vperm.xlu1 %2846, %v290_v43   ;;  %361 = vperm.xlu0 %2845, %v275_v44   ;;  %v576_v43 = vld [vmem:[%s4361_s4 + $0x50] sm:$0xff]  ;;  %v575_v44 = vld [vmem:[%s4361_s4 + $0x48] sm:$0xff] }
  0x6c   :  { %v3030_v45 = vpop.permute.xlu2 %109 }
  0x72   :  { %426 = vperm.xlu2 %2847, %v288_v46   ;;  %v574_v46 = vld [vmem:[%s4361_s4 + $0x40] sm:$0xff] }
  0x73   :  { %351 = vperm.xlu1 %2846, %v273_v47   ;;  %346 = vperm.xlu0 %2845, %v272_v48  }
  0x74   :  { %v3041_v49 = vpop.permute.xlu2 %124 }
  0x75   :  { %v3043_v50 = vpop.permute.xlu1 %79  ;;  %v3045_v51 = vpop.permute.xlu0 %69 }
  0x7a   :  { %341 = vperm.xlu2 %2847, %v271_v52  }
  0x7b   :  { %336 = vperm.xlu1 %2846, %v270_v53   ;;  %431 = vperm.xlu0 %2845, %v289_v54   ;;  %v579_v53 = vld [vmem:[%s4361_s4 + $0x68] sm:$0xff]  ;;  %v3189_v54 = vld [vmem:[%s4359_s0] ss:$0 sm:$0xff] }
  0x7c   :  { %v3056_v55 = vpop.permute.xlu2 %139 }
  0x7d   :  { %v3058_v56 = vpop.permute.xlu1 %84  ;;  %v3060_v57 = vpop.permute.xlu0 %74 }
  0x82   :  { %326 = vperm.xlu2 %2847, %v268_v58   ;;  %v578_v58 = vld [vmem:[%s4361_s4 + $0x60] sm:$0xff] }
  0x83   :  { %421 = vperm.xlu1 %2846, %v287_v59   ;;  %416 = vperm.xlu0 %2845, %v286_v60   ;;  %v577_v59 = vld [vmem:[%s4361_s4 + $0x58] sm:$0xff] }
  0x84   :  { %v3071_v61 = vpop.permute.xlu2 %154 }
  0x85   :  { %v3073_v62 = vpop.permute.xlu1 %104  ;;  %v3075_v63 = vpop.permute.xlu0 %99 }
  0x8a   :  { %411 = vperm.xlu2 %2847, %v285_v0   ;;  %v244_v0 = vmul.f32 %v3189_v54, %v3056_v55 }
  0x8b   :  { %406 = vperm.xlu1 %2846, %v284_v1   ;;  %331 = vperm.xlu0 %2845, %v269_v2  }
  0x8c   :  { %v3086_v3 = vpop.permute.xlu2 %169 }
  0x8d   :  { %v3088_v4 = vpop.permute.xlu1 %119  ;;  %v3090_v5 = vpop.permute.xlu0 %114 }
  0x92   :  { %396 = vperm.xlu2 %2847, %v282_v6  }
  0x93   :  { %321 = vperm.xlu1 %2846, %v267_v7   ;;  %316 = vperm.xlu0 %2845, %v266_v8  }
  0x94   :  { %v3101_v9 = vpop.permute.xlu2 %184 }
  0x95   :  { %v3103_v10 = vpop.permute.xlu1 %134  ;;  %v3105_v11 = vpop.permute.xlu0 %129 }
  0x9a   :  { %311 = vperm.xlu2 %2847, %v265_v12   ;;  %v582_v12 = vld [vmem:[%s4361_s4 + $0x80] sm:$0xff] }
  0x9b   :  { %306 = vperm.xlu1 %2846, %v264_v13   ;;  %401 = vperm.xlu0 %2845, %v283_v14   ;;  %v581_v13 = vld [vmem:[%s4361_s4 + $0x78] sm:$0xff]  ;;  %v580_v14 = vld [vmem:[%s4361_s4 + $0x70] sm:$0xff] }
  0x9c   :  { %v3116_v15 = vpop.permute.xlu2 %199 }
  0x9d   :  { %v3118_v16 = vpop.permute.xlu1 %149  ;;  %v145_v17 = vpop.permute.xlu0 %144 }
  0x9e   :  { %v245_v60 = vmul.f32 %v3189_v54, %v145_v17 }
  0xa2   :  { %376 = vperm.xlu2 %2847, %v278_v18  }
  0xa3   :  { %391 = vperm.xlu1 %2846, %v281_v19   ;;  %386 = vperm.xlu0 %2845, %v280_v20  }
  0xa4   :  { %v3129_v21 = vpop.permute.xlu2 %214 }
  0xa5   :  { %v3131_v22 = vpop.permute.xlu1 %164  ;;  %v3133_v23 = vpop.permute.xlu0 %159 }
  0xaa   :  { %605 = vperm.xlu2 %2847, %v567_v24  }
  0xab   :  { %600 = vperm.xlu1 %2846, %v566_v25   ;;  %381 = vperm.xlu0 %2845, %v279_v26  }
  0xac   :  { %v3148_v29 = vpop.permute.xlu2 %296 }
  0xad   :  { %v3144_v27 = vpop.permute.xlu1 %179  ;;  %v3146_v28 = vpop.permute.xlu0 %174 }
  0xb2   :  { %620 = vperm.xlu2 %2847, %v570_v30  }
  0xb3   :  { %615 = vperm.xlu1 %2846, %v569_v31   ;;  %610 = vperm.xlu0 %2845, %v568_v32   ;;  %v585_v32 = vld [vmem:[%s4361_s4 + $0x98] sm:$0xff] }
  0xb4   :  { %v372_v36 = vpop.permute.xlu2 %371 }
  0xb5   :  { %v3159_v33 = vpop.permute.xlu1 %194  ;;  %v3161_v34 = vpop.permute.xlu0 %189  ;;  %v469_v1 = vadd.f32 %v372_v36, %v245_v60  ;;  %v583_v36 = vld [vmem:[%s4361_s4 + $0x88] sm:$0xff] }
  0xb7   :  { %v501_v55 = vmax.f32 %v469_v1, 0.0 }
  0xba   :  { %635 = vperm.xlu2 %2847, %v573_v35   ;;  %v584_v35 = vld [vmem:[%s4361_s4 + $0x90] sm:$0xff] }
  0xbb   :  { %630 = vperm.xlu1 %2846, %v572_v38   ;;  %625 = vperm.xlu0 %2845, %v571_v39  }
  0xbc   :  { %v357_v47 = vpop.permute.xlu2 %356 }
  0xbd   :  { %v210_v40 = vpop.permute.xlu1 %209  ;;  %v3172_v42 = vpop.permute.xlu0 %204 }
  0xc2   :  { %650 = vperm.xlu2 %2847, %v576_v43   ;;  %v242_v43 = vmul.f32 %v3189_v54, %v3105_v11  ;;  %v588_v11 = vld [vmem:[%s4361_s4 + $0xb0] sm:$0xff] }
  0xc3   :  { %645 = vperm.xlu1 %2846, %v575_v44   ;;  %640 = vperm.xlu0 %2845, %v574_v46   ;;  %v259_v44 = vmul.f32 %v3189_v54, %v3129_v21 }
  0xc4   :  { %v442_v2 = vpop.permute.xlu2 %441 }
  0xc5   :  { %v225_v48 = vpop.permute.xlu1 %224  ;;  %v220_v52 = vpop.permute.xlu0 %219 }
  0xc6   :  { %v261_v19 = vmul.f32 %v3189_v54, %v225_v48  ;;  %v260_v20 = vmul.f32 %v3189_v54, %v220_v52  ;;  %v243_v48 = vmul.f32 %v3189_v54, %v3103_v10  ;;  %v466_v52 = vadd.f32 %v357_v47, %v242_v43  ;;  %v587_v10 = vld [vmem:[%s4361_s4 + $0xa8] sm:$0xff] }
  0xc8   :  { %v498_v21 = vmax.f32 %v466_v52, 0.0 }
  0xca   :  { %665 = vperm.xlu2 %2847, %v579_v53   ;;  %v258_v53 = vmul.f32 %v3189_v54, %v210_v40  ;;  %v586_v40 = vld [vmem:[%s4361_s4 + $0xa0] sm:$0xff] }
  0xcb   :  { %660 = vperm.xlu1 %2846, %v578_v58   ;;  %655 = vperm.xlu0 %2845, %v577_v59   ;;  %v483_v58 = vadd.f32 %v442_v2, %v259_v44 }
  0xcc   :  { %v427_v26 = vpop.permute.xlu2 %426 }
  0xcd   :  { %v367_v6 = vpop.permute.xlu1 %366  ;;  %v3200_v7 = vpop.permute.xlu0 %301 }
  0xce   :  { %v468_v8 = vadd.f32 %v367_v6, %v244_v0  ;;  %v515_v6 = vmax.f32 %v483_v58, 0.0 }
  0xd0   :  { %v500_v17 = vmax.f32 %v468_v8, 0.0 }
  0xd2   :  { %680 = vperm.xlu2 %2847, %v582_v12   ;;  %v557_v18 = vpack.c.bf16 %v501_v55, %v500_v17  ;;  %v240_v17 = vmul.f32 %v3189_v54, %v3088_v4  ;;  %v239_v4 = vmul.f32 %v3189_v54, %v3090_v5 }
  0xd3   :  { %675 = vperm.xlu1 %2846, %v581_v13   ;;  %670 = vperm.xlu0 %2845, %v580_v14   ;;  %v241_v14 = vmul.f32 %v3189_v54, %v3041_v49  ;;  %v589_v49 = vld [vmem:[%s4361_s4 + $0xb8] sm:$0xff] }
  0xd4   :  { %918 = vmatpush.bf16.msra.mxu0 %v557_v18  ;;  %v342_v8 = vpop.permute.xlu2 %341 }
  0xd5   :  { %v452_v24 = vpop.permute.xlu1 %451  ;;  %v447_v25 = vpop.permute.xlu0 %446  ;;  %v463_v44 = vadd.f32 %v342_v8, %v239_v4 }
  0xd6   :  { %v485_v30 = vadd.f32 %v452_v24, %v261_v19  ;;  %v484_v31 = vadd.f32 %v447_v25, %v260_v20  ;;  %v591_v24 = vld [vmem:[%s4361_s4 + $0xc8] sm:$0xff] }
  0xd7   :  { %v495_v58 = vmax.f32 %v463_v44, 0.0 }
  0xd8   :  { %v516_v38 = vmax.f32 %v484_v31, 0.0  ;;  %v517_v39 = vmax.f32 %v485_v30, 0.0  ;;  %v590_v31 = vld [vmem:[%s4361_s4 + $0xc0] sm:$0xff] }
  0xda   :  { %695 = vperm.xlu2 %2847, %v585_v32   ;;  %v565_v46 = vpack.c.bf16 %v517_v39, %v516_v38  ;;  %v256_v32 = vmul.f32 %v3189_v54, %v3116_v15  ;;  %v238_v38 = vmul.f32 %v3189_v54, %v3030_v45  ;;  %v257_v39 = vmul.f32 %v3189_v54, %v3172_v42  ;;  %v594_v15 = vld [vmem:[%s4361_s4 + $0xe0] sm:$0xff]  ;;  %v593_v45 = vld [vmem:[%s4361_s4 + $0xd8] sm:$0xff]  ;;  %v592_v42 = vld [vmem:[%s4361_s4 + $0xd0] sm:$0xff] }
  0xdb   :  { %690 = vperm.xlu1 %2846, %v584_v35   ;;  %685 = vperm.xlu0 %2845, %v583_v36  }
  0xdc   :  { %1007 = vmatpush.bf16.msra.mxu1 %v565_v46  ;;  %v327_v35 = vpop.permute.xlu2 %326  ;;  %v480_v43 = vadd.f32 %v427_v26, %v256_v32 }
  0xdd   :  { %v437_v59 = vpop.permute.xlu1 %436  ;;  %v362_v60 = vpop.permute.xlu0 %361 }
  0xde   :  { %v482_v0 = vadd.f32 %v437_v59, %v258_v53  ;;  %v467_v1 = vadd.f32 %v362_v60, %v243_v48  ;;  %v512_v53 = vmax.f32 %v480_v43, 0.0  ;;  %v235_v43 = vmul.f32 %v3189_v54, %v3019_v41 }
  0xe0   :  { %v514_v12 = vmax.f32 %v482_v0, 0.0  ;;  %v499_v13 = vmax.f32 %v467_v1, 0.0  ;;  %v255_v1 = vmul.f32 %v3189_v54, %v3159_v33  ;;  %v596_v33 = vld [vmem:[%s4361_s4 + $0xf0] sm:$0xff] }
  0xe2   :  { %710 = vperm.xlu2 %2847, %v588_v11   ;;  %v556_v47 = vpack.c.bf16 %v499_v13, %v498_v21  ;;  %v564_v2 = vpack.c.bf16 %v515_v6, %v514_v12  ;;  %v254_v11 = vmul.f32 %v3189_v54, %v3161_v34  ;;  %v595_v34 = vld [vmem:[%s4361_s4 + $0xe8] sm:$0xff] }
  0xe3   :  { %705 = vperm.xlu1 %2846, %v587_v10   ;;  %700 = vperm.xlu0 %2845, %v586_v40   ;;  %v597_v10 = vld [vmem:[%s4361_s4 + $0xf8] sm:$0xff] }
  0xe4   :  { %919 = vmatpush.bf16.msra.mxu0 %v556_v47  ;;  %1008 = vmatpush.bf16.msra.mxu1 %v564_v2  ;;  %v412_v21 = vpop.permute.xlu2 %411  ;;  %v236_v2 = vmul.f32 %v3189_v54, %v3075_v63 }
  0xe5   :  { %v352_v55 = vpop.permute.xlu1 %351  ;;  %v347_v18 = vpop.permute.xlu0 %346 }
  0xe6   :  { %v465_v19 = vadd.f32 %v352_v55, %v241_v14  ;;  %v464_v20 = vadd.f32 %v347_v18, %v240_v17  ;;  %v253_v14 = vmul.f32 %v3189_v54, %v3101_v9  ;;  %v237_v55 = vmul.f32 %v3189_v54, %v3073_v62  ;;  %v1194_v9 = vld [vmem:[%s4362_s6 + $0x10] sm:$0xff]  ;;  %v1193_v62 = vld [vmem:[%s4362_s6 + $0x8] sm:$0xff] }
  0xe7   :  { %v252_v18 = vmul.f32 %v3189_v54, %v3144_v27  ;;  %v1192_v27 = vld [vmem:[%s4362_s6] sm:$0xff] }
  0xe8   :  { %v497_v25 = vmax.f32 %v465_v19, 0.0  ;;  %v496_v30 = vmax.f32 %v464_v20, 0.0  ;;  %v460_v19 = vadd.f32 %v327_v35, %v236_v2  ;;  %v477_v20 = vadd.f32 %v412_v21, %v253_v14 }
  0xe9   :  { %v248_v2 = vmul.f32 %v3189_v54, %v3133_v23 }
  0xea   :  { %725 = vperm.xlu2 %2847, %v591_v24   ;;  %v555_v36 = vpack.c.bf16 %v497_v25, %v496_v30  ;;  %v509_v4 = vmax.f32 %v477_v20, 0.0 }
  0xeb   :  { %720 = vperm.xlu1 %2846, %v590_v31   ;;  %715 = vperm.xlu0 %2845, %v589_v49   ;;  %v492_v49 = vmax.f32 %v460_v19, 0.0  ;;  %v2749_v19 = vld [vmem:[%s4363_s3 + $0x4] sm:$0xf0] }
  0xec   :  { %920 = vmatpush.bf16.msra.mxu0 %v555_v36  ;;  %v397_v31 = vpop.permute.xlu2 %396 }
  0xed   :  { %v337_v46 = vpop.permute.xlu1 %336  ;;  %v432_v48 = vpop.permute.xlu0 %431 }
  0xee   :  { %v462_v5 = vadd.f32 %v337_v46, %v238_v38  ;;  %v481_v52 = vadd.f32 %v432_v48, %v257_v39  ;;  %v234_v39 = vmul.f32 %v3189_v54, %v3008_v37  ;;  %v1195_v37 = vld [vmem:[%s4362_s6 + $0x18] sm:$0xff] }
  0xf0   :  { %v494_v59 = vmax.f32 %v462_v5, 0.0  ;;  %v513_v60 = vmax.f32 %v481_v52, 0.0  ;;  %v1197_v52 = vld [vmem:[%s4362_s6 + $0x28] sm:$0xff] }
  0xf2   :  { %740 = vperm.xlu2 %2847, %v594_v15   ;;  %v554_v26 = vpack.c.bf16 %v495_v58, %v494_v59  ;;  %v563_v0 = vpack.c.bf16 %v513_v60, %v512_v53  ;;  %v1196_v58 = vld [vmem:[%s4362_s6 + $0x20] sm:$0xff]  ;;  %v233_v59 = vmul.f32 %v3189_v54, %v3058_v56  ;;  %v250_v60 = vmul.f32 %v3189_v54, %v3086_v3 }
  0xf3   :  { %735 = vperm.xlu1 %2846, %v593_v45   ;;  %730 = vperm.xlu0 %2845, %v592_v42   ;;  %v232_v42 = vmul.f32 %v3189_v54, %v3043_v50  ;;  %v230_v56 = vmul.f32 %v3189_v54, %v3045_v51  ;;  %v1199_v51 = vld [vmem:[%s4362_s6 + $0x38] sm:$0xff] }
  0xf4   :  { %921 = vmatpush.bf16.msra.mxu0 %v554_v26  ;;  %1009 = vmatpush.bf16.msra.mxu1 %v563_v0  ;;  %v312_v41 = vpop.permute.xlu2 %311  ;;  %v231_v26 = vmul.f32 %v3189_v54, %v3060_v57  ;;  %v251_v0 = vmul.f32 %v3189_v54, %v3146_v28  ;;  %v1200_v57 = vld [vmem:[%s4362_s6 + $0x40] sm:$0xff] }
  0xf5   :  { %v422_v6 = vpop.permute.xlu1 %421  ;;  %v417_v8 = vpop.permute.xlu0 %416 }
  0xf6   :  { %v479_v12 = vadd.f32 %v422_v6, %v255_v1  ;;  %v478_v13 = vadd.f32 %v417_v8, %v254_v11  ;;  %v474_v1 = vadd.f32 %v397_v31, %v250_v60  ;;  %v457_v11 = vadd.f32 %v312_v41, %v233_v59  ;;  %v1202_v31 = vld [vmem:[%s4362_s6 + $0x50] sm:$0xff]  ;;  %v1212_v41 = vld [vmem:[%s4362_s6 + $0xa0] sm:$0xff]  ;;  %v1211_v59 = vld [vmem:[%s4362_s6 + $0x98] sm:$0xff] }
  0xf7   :  { %v455_v6 = vadd.f32 %v3200_v7, %v231_v26  ;;  %v1198_v7 = vld [vmem:[%s4362_s6 + $0x30] sm:$0xff] }
  0xf8   :  { %v511_v40 = vmax.f32 %v479_v12, 0.0  ;;  %v510_v47 = vmax.f32 %v478_v13, 0.0  ;;  %v454_v12 = vadd.f32 %v3148_v29, %v230_v56  ;;  %v506_v13 = vmax.f32 %v474_v1, 0.0  ;;  %v1210_v60 = vld [vmem:[%s4362_s6 + $0x90] sm:$0xff]  ;;  %v2753_v1 = vld [vmem:[%s4363_s3 + $0x24] sm:$0xf0] }
  0xf9   :  { %v489_v28 = vmax.f32 %v457_v11, 0.0  ;;  %v1215_v11 = vld [vmem:[%s4362_s6 + $0xb8] sm:$0xff]  ;;  %v1214_v56 = vld [vmem:[%s4362_s6 + $0xb0] sm:$0xff] }
  0xfa   :  { %755 = vperm.xlu2 %2847, %v597_v10   ;;  %v562_v17 = vpack.c.bf16 %v511_v40, %v510_v47  ;;  %v487_v47 = vmax.f32 %v455_v6, 0.0  ;;  %v486_v14 = vmax.f32 %v454_v12, 0.0  ;;  %v1218_v6 = vld [vmem:[%s4362_s6 + $0xd0] sm:$0xff]  ;;  %v2752_v12 = vld [vmem:[%s4363_s3 + $0x24] sm:$0xf] }
  0xfb   :  { %750 = vperm.xlu1 %2846, %v596_v33   ;;  %745 = vperm.xlu0 %2845, %v595_v34   ;;  %v249_v34 = vmul.f32 %v3189_v54, %v3131_v22  ;;  %v1203_v22 = vld [vmem:[%s4362_s6 + $0x58] sm:$0xff] }
  0xfc   :  { %1010 = vmatpush.bf16.msra.mxu1 %v562_v17  ;;  %v377_v23 = vpop.permute.xlu2 %376 }
  0xfd   :  { %v407_v24 = vpop.permute.xlu1 %406  ;;  %v332_v25 = vpop.permute.xlu0 %331 }
  0xfe   :  { %v476_v30 = vadd.f32 %v407_v24, %v252_v18  ;;  %v461_v63 = vadd.f32 %v332_v25, %v237_v55  ;;  %v2430_v18 = vld [vmem:[%s4363_s3] sm:$0xf]  ;;  %v550_v25 = vpack.c.bf16 %v487_v47, %v486_v14  ;;  %v2456_v14 = vld [vmem:[%s4363_s3 + $0x38] sm:$0xf0] }
 0x100   :  { %v508_v32 = vmax.f32 %v476_v30, 0.0  ;;  %v493_v36 = vmax.f32 %v461_v63, 0.0 }
 0x102   :  { %1252 = vperm.xlu2 %2847, %v1194_v9   ;;  %v553_v35 = vpack.c.bf16 %v493_v36, %v492_v49  ;;  %v561_v38 = vpack.c.bf16 %v509_v4, %v508_v32  ;;  %v1201_v9 = vld [vmem:[%s4362_s6 + $0x48] sm:$0xff]  ;;  %v2431_v49 = vor.u32 %v2749_v19, %v2430_v18  ;;  %v246_v4 = vmul.f32 %v3189_v54, %v3118_v16  ;;  %v1227_v19 = vld [vmem:[%s4362_s6 + $0x118] sm:$0xff] }
 0x103   :  { %1247 = vperm.xlu1 %2846, %v1193_v62   ;;  %1242 = vperm.xlu0 %2845, %v1192_v27   ;;  %v247_v62 = vmul.f32 %v3189_v54, %v3071_v61  ;;  %v1205_v16 = vld [vmem:[%s4362_s6 + $0x68] sm:$0xff]  ;;  %v2748_v61 = vld [vmem:[%s4363_s3 + $0x4] sm:$0xf] }
 0x104   :  { %922 = vmatpush.bf16.msra.mxu0 %v553_v35  ;;  %1011 = vmatpush.bf16.msra.mxu1 %v561_v38  ;;  %v470_v36 = vadd.f32 %v377_v23, %v246_v4  ;;  %v2432_v54 = vld [vmem:[%s4363_s3 + $0x8] sm:$0xf0]  ;;  %v2757_v18 = vld [vmem:[%s4363_s3 + $0x44] sm:$0xf0]  ;;  %v2759_v4 = vld [vmem:[%s4363_s3 + $0x54] sm:$0xf0] }
 0x105   :  { %v322_v44 = vpop.permute.xlu1 %321  ;;  %v317_v46 = vpop.permute.xlu0 %316  ;;  %v1229_v23 = vld [vmem:[%s4362_s6 + $0x128] sm:$0xff] }
 0x106   :  { %v459_v48 = vadd.f32 %v322_v44, %v235_v43  ;;  %v458_v5 = vadd.f32 %v317_v46, %v234_v39  ;;  %v502_v38 = vmax.f32 %v470_v36, 0.0  ;;  %v1206_v39 = vld [vmem:[%s4362_s6 + $0x70] sm:$0xff]  ;;  %v1204_v44 = vld [vmem:[%s4362_s6 + $0x60] sm:$0xff] }
 0x107   :  { %v1232_v36 = vld [vmem:[%s4362_s6 + $0x140] sm:$0xff] }
 0x108   :  { %v491_v15 = vmax.f32 %v459_v48, 0.0  ;;  %v490_v53 = vmax.f32 %v458_v5, 0.0  ;;  %v2435_v48 = vor.u32 %v2748_v61, %v2432_v54  ;;  %v2438_v5 = vld [vmem:[%s4363_s3 + $0x10] sm:$0xf]  ;;  %v2478_v61 = vld [vmem:[%s4363_s3 + $0x60] sm:$0xf] }
 0x109   :  { %v2761_v54 = vld [vmem:[%s4363_s3 + $0x64] sm:$0xf0] }
 0x10a   :  { %1267 = vperm.xlu2 %2847, %v1197_v52   ;;  %v552_v45 = vpack.c.bf16 %v491_v15, %v490_v53  ;;  %v2751_v52 = vld [vmem:[%s4363_s3 + $0x14] sm:$0xf0]  ;;  %v1209_v15 = vld [vmem:[%s4362_s6 + $0x88] sm:$0xff]  ;;  %v1208_v53 = vld [vmem:[%s4362_s6 + $0x80] sm:$0xff] }
 0x10b   :  { %1262 = vperm.xlu1 %2846, %v1196_v58   ;;  %1257 = vperm.xlu0 %2845, %v1195_v37   ;;  %v1207_v58 = vld [vmem:[%s4362_s6 + $0x78] sm:$0xff]  ;;  %v2439_v37 = vor.u32 %v2751_v52, %v2438_v5  ;;  %v1237_v5 = vld [vmem:[%s4362_s6 + $0x168] sm:$0xff]  ;;  %v2479_v52 = vor.u32 %v2761_v54, %v2478_v61 }
 0x10c   :  { %923 = vmatpush.bf16.msra.mxu0 %v552_v45  ;;  %v2750_v45 = vld [vmem:[%s4363_s3 + $0x14] sm:$0xf] }
 0x10d   :  { %v307_v3 = vpop.permute.xlu1 %306  ;;  %v402_v21 = vpop.permute.xlu0 %401 }
 0x10e   :  { %v456_v8 = vadd.f32 %v307_v3, %v232_v42  ;;  %v475_v50 = vadd.f32 %v402_v21, %v251_v0  ;;  %v2440_v42 = vld [vmem:[%s4363_s3 + $0x18] sm:$0xf0]  ;;  %v2446_v0 = vld [vmem:[%s4363_s3 + $0x20] sm:$0xf]  ;;  %v1213_v3 = vld [vmem:[%s4362_s6 + $0xa8] sm:$0xff] }
 0x10f   :  { %v2443_v26 = vor.u32 %v2750_v45, %v2440_v42  ;;  %v2447_v21 = vor.u32 %v2753_v1, %v2446_v0  ;;  %v2763_v45 = vld [vmem:[%s4363_s3 + $0x74] sm:$0xf0]  ;;  %v2031_v42 = vld [vmem:[%s4364_s7 + $0x28] sm:$0xff] }
 0x110   :  { %v488_v10 = vmax.f32 %v456_v8, 0.0  ;;  %v507_v40 = vmax.f32 %v475_v50, 0.0  ;;  %v1217_v8 = vld [vmem:[%s4362_s6 + $0xc8] sm:$0xff]  ;;  %v1216_v50 = vld [vmem:[%s4362_s6 + $0xc0] sm:$0xff]  ;;  %v2029_v0 = vld [vmem:[%s4364_s7 + $0x18] sm:$0xff] }
 0x112   :  { %1282 = vperm.xlu2 %2847, %v1200_v57   ;;  %v551_v33 = vpack.c.bf16 %v489_v28, %v488_v10  ;;  %v560_v29 = vpack.c.bf16 %v507_v40, %v506_v13  ;;  %v2448_v57 = vld [vmem:[%s4363_s3 + $0x28] sm:$0xf0]  ;;  %v2454_v28 = vld [vmem:[%s4363_s3 + $0x30] sm:$0xf]  ;;  %v2755_v10 = vld [vmem:[%s4363_s3 + $0x34] sm:$0xf0] }
 0x113   :  { %1277 = vperm.xlu1 %2846, %v1199_v51   ;;  %1272 = vperm.xlu0 %2845, %v1198_v7   ;;  %v2451_v13 = vor.u32 %v2752_v12, %v2448_v57  ;;  %v1221_v40 = vld [vmem:[%s4362_s6 + $0xe8] sm:$0xff]  ;;  %v1220_v51 = vld [vmem:[%s4362_s6 + $0xe0] sm:$0xff]  ;;  %v1219_v7 = vld [vmem:[%s4362_s6 + $0xd8] sm:$0xff]  ;;  %v2455_v47 = vor.u32 %v2755_v10, %v2454_v28 }
 0x114   :  { %924 = vmatpush.bf16.msra.mxu0 %v551_v33  ;;  %1012 = vmatpush.bf16.msra.mxu1 %v560_v29  ;;  %v1224_v33 = vld [vmem:[%s4362_s6 + $0x100] sm:$0xff]  ;;  %v1223_v29 = vld [vmem:[%s4362_s6 + $0xf8] sm:$0xff]  ;;  %v2765_v12 = vld [vmem:[%s4363_s3 + $0x84] sm:$0xf0] }
 0x115   :  { %v392_v17 = vpop.permute.xlu1 %391  ;;  %v387_v55 = vpop.permute.xlu0 %386  ;;  %v2037_v57 = vld [vmem:[%s4364_s7 + $0x58] sm:$0xff]  ;;  %v2035_v28 = vld [vmem:[%s4364_s7 + $0x48] sm:$0xff] }
 0x116   :  { %v473_v20 = vadd.f32 %v392_v17, %v249_v34  ;;  %v472_v24 = vadd.f32 %v387_v55, %v248_v2  ;;  %v1222_v34 = vld [vmem:[%s4362_s6 + $0xf0] sm:$0xff]  ;;  %v2462_v55 = vld [vmem:[%s4363_s3 + $0x40] sm:$0xf] }
 0x117   :  { %v2754_v2 = vld [vmem:[%s4363_s3 + $0x34] sm:$0xf] }
 0x118   :  { %v505_v30 = vmax.f32 %v473_v20, 0.0  ;;  %v504_v63 = vmax.f32 %v472_v24, 0.0  ;;  %925 = vmatpush.bf16.msra.mxu0 %v550_v25  ;;  %v2459_v17 = vor.u32 %v2754_v2, %v2456_v14  ;;  %v1226_v20 = vld [vmem:[%s4362_s6 + $0x110] sm:$0xff]  ;;  %v1225_v24 = vld [vmem:[%s4362_s6 + $0x108] sm:$0xff]  ;;  %v2463_v25 = vor.u32 %v2757_v18, %v2462_v55 }
 0x119   :  { %v2496_v2 = vld [vmem:[%s4363_s3 + $0x88] sm:$0xf0] }
 0x11a   :  { %1297 = vperm.xlu2 %2847, %v1203_v22   ;;  %v559_v32 = vpack.c.bf16 %v505_v30, %v504_v63  ;;  %v1230_v22 = vld [vmem:[%s4362_s6 + $0x130] sm:$0xff]  ;;  %v1228_v30 = vld [vmem:[%s4362_s6 + $0x120] sm:$0xff] }
 0x11b   :  { %1292 = vperm.xlu1 %2846, %v1202_v31   ;;  %1287 = vperm.xlu0 %2845, %v1201_v9   ;;  %v2756_v63 = vld [vmem:[%s4363_s3 + $0x44] sm:$0xf]  ;;  %v2464_v31 = vld [vmem:[%s4363_s3 + $0x48] sm:$0xf0] }
 0x11c   :  { %926 = vmatmul.bf16.vlgmr.msra.gmra.mxu0 %v2431_v49  ;;  %1013 = vmatpush.bf16.msra.mxu1 %v559_v32  ;;  %v2467_v9 = vor.u32 %v2756_v63, %v2464_v31  ;;  %v2470_v49 = vld [vmem:[%s4363_s3 + $0x50] sm:$0xf]  ;;  %v1233_v32 = vld [vmem:[%s4362_s6 + $0x148] sm:$0xff]  ;;  %v606_v63 = vpop.permute.xlu2 %605 }
 0x11d   :  { %v382_v27 = vpop.permute.xlu0 %381 }
 0x11e   :  { %v471_v35 = vadd.f32 %v382_v27, %v247_v62  ;;  %v1231_v62 = vld [vmem:[%s4362_s6 + $0x138] sm:$0xff]  ;;  %v2471_v27 = vor.u32 %v2759_v4, %v2470_v49 }
 0x120   :  { %v503_v43 = vmax.f32 %v471_v35, 0.0  ;;  %v1236_v35 = vld [vmem:[%s4362_s6 + $0x160] sm:$0xff] }
 0x122   :  { %1312 = vperm.xlu2 %2847, %v1206_v39   ;;  %v558_v46 = vpack.c.bf16 %v503_v43, %v502_v38  ;;  %v1235_v38 = vld [vmem:[%s4362_s6 + $0x158] sm:$0xff]  ;;  %v1234_v39 = vld [vmem:[%s4362_s6 + $0x150] sm:$0xff] }
 0x123   :  { %1307 = vperm.xlu1 %2846, %v1205_v16   ;;  %1302 = vperm.xlu0 %2845, %v1204_v44   ;;  %v2758_v16 = vld [vmem:[%s4363_s3 + $0x54] sm:$0xf]  ;;  %v2472_v43 = vld [vmem:[%s4363_s3 + $0x58] sm:$0xf0] }
 0x124   :  { %1014 = vmatpush.bf16.msra.mxu1 %v558_v46  ;;  %v2475_v44 = vor.u32 %v2758_v16, %v2472_v43  ;;  %v1239_v46 = vld [vmem:[%s4362_s6 + $0x178] sm:$0xff] }
 0x125   :  { %v611_v43 = vpop.permute.xlu0 %610 }
 0x127   :  { %1015 = vmatmul.bf16.vlgmr.msra.gmra.mxu1 %v2435_v48  ;;  %v1238_v48 = vld [vmem:[%s4362_s6 + $0x170] sm:$0xff] }
 0x12a   :  { %1327 = vperm.xlu2 %2847, %v1209_v15   ;;  %v2028_v15 = vld [vmem:[%s4364_s7 + $0x10] sm:$0xff] }
 0x12b   :  { %1322 = vperm.xlu1 %2846, %v1208_v53   ;;  %1317 = vperm.xlu0 %2845, %v1207_v58   ;;  %v2027_v53 = vld [vmem:[%s4364_s7 + $0x8] sm:$0xff]  ;;  %v2026_v58 = vld [vmem:[%s4364_s7] sm:$0xff] }
 0x12c   :  { %931 = vmatmul.bf16.gmra.mxu0 %v2439_v37  ;;  %v2760_v37 = vld [vmem:[%s4363_s3 + $0x64] sm:$0xf] }
 0x132   :  { %1342 = vperm.xlu2 %2847, %v1212_v41   ;;  %v2480_v41 = vld [vmem:[%s4363_s3 + $0x68] sm:$0xf0] }
 0x133   :  { %1337 = vperm.xlu1 %2846, %v1211_v59   ;;  %1332 = vperm.xlu0 %2845, %v1210_v60   ;;  %v2483_v59 = vor.u32 %v2760_v37, %v2480_v41  ;;  %v2486_v60 = vld [vmem:[%s4363_s3 + $0x70] sm:$0xf] }
 0x134   :  { %v2487_v1 = vor.u32 %v2763_v45, %v2486_v60 }
 0x137   :  { %1020 = vmatmul.bf16.gmra.mxu1 %v2443_v26  ;;  %v2030_v26 = vld [vmem:[%s4364_s7 + $0x20] sm:$0xff] }
 0x13a   :  { %1357 = vperm.xlu2 %2847, %v1215_v11   ;;  %v2034_v11 = vld [vmem:[%s4364_s7 + $0x40] sm:$0xff] }
 0x13b   :  { %1352 = vperm.xlu1 %2846, %v1214_v56   ;;  %1347 = vperm.xlu0 %2845, %v1213_v3   ;;  %v2033_v56 = vld [vmem:[%s4364_s7 + $0x38] sm:$0xff]  ;;  %v2032_v3 = vld [vmem:[%s4364_s7 + $0x30] sm:$0xff] }
 0x13c   :  { %936 = vmatmul.bf16.gmra.mxu0 %v2447_v21  ;;  %v2762_v21 = vld [vmem:[%s4363_s3 + $0x74] sm:$0xf] }
 0x142   :  { %1372 = vperm.xlu2 %2847, %v1218_v6   ;;  %v2488_v6 = vld [vmem:[%s4363_s3 + $0x78] sm:$0xf0] }
 0x143   :  { %1367 = vperm.xlu1 %2846, %v1217_v8   ;;  %1362 = vperm.xlu0 %2845, %v1216_v50   ;;  %v2491_v8 = vor.u32 %v2762_v21, %v2488_v6  ;;  %v2494_v50 = vld [vmem:[%s4363_s3 + $0x80] sm:$0xf] }
 0x144   :  { %v2495_v10 = vor.u32 %v2765_v12, %v2494_v50 }
 0x147   :  { %1025 = vmatmul.bf16.gmra.mxu1 %v2451_v13  ;;  %v2036_v13 = vld [vmem:[%s4364_s7 + $0x50] sm:$0xff] }
 0x14a   :  { %1387 = vperm.xlu2 %2847, %v1221_v40   ;;  %v601_v40 = vpop.permute.xlu1 %600 }
 0x14b   :  { %1382 = vperm.xlu1 %2846, %v1220_v51   ;;  %1377 = vperm.xlu0 %2845, %v1219_v7  }
 0x14c   :  { %941 = vmatmul.bf16.gmra.mxu0 %v2455_v47  ;;  %v2040_v47 = vld [vmem:[%s4364_s7 + $0x70] sm:$0xff] }
 0x152   :  { %1402 = vperm.xlu2 %2847, %v1224_v33   ;;  %v2039_v33 = vld [vmem:[%s4364_s7 + $0x68] sm:$0xff]  ;;  %v616_v41 = vpop.permute.xlu1 %615 }
 0x153   :  { %1397 = vperm.xlu1 %2846, %v1223_v29   ;;  %1392 = vperm.xlu0 %2845, %v1222_v34   ;;  %v2038_v29 = vld [vmem:[%s4364_s7 + $0x60] sm:$0xff] }
 0x154   :  { %v2764_v34 = vld [vmem:[%s4363_s3 + $0x84] sm:$0xf] }
 0x157   :  { %1030 = vmatmul.bf16.gmra.mxu1 %v2459_v17  ;;  %v2499_v17 = vor.u32 %v2764_v34, %v2496_v2 }
 0x15a   :  { %1417 = vperm.xlu2 %2847, %v1227_v19   ;;  %v2502_v19 = vld [vmem:[%s4363_s3 + $0x90] sm:$0xf] }
 0x15b   :  { %1412 = vperm.xlu1 %2846, %v1226_v20   ;;  %1407 = vperm.xlu0 %2845, %v1225_v24   ;;  %v2767_v20 = vld [vmem:[%s4363_s3 + $0x94] sm:$0xf0]  ;;  %v2043_v24 = vld [vmem:[%s4364_s7 + $0x88] sm:$0xff] }
 0x15c   :  { %946 = vmatmul.bf16.gmra.mxu0 %v2463_v25  ;;  %v2042_v25 = vld [vmem:[%s4364_s7 + $0x80] sm:$0xff] }
 0x162   :  { %1432 = vperm.xlu2 %2847, %v1230_v22   ;;  %v2041_v22 = vld [vmem:[%s4364_s7 + $0x78] sm:$0xff] }
 0x163   :  { %1427 = vperm.xlu1 %2846, %v1229_v23   ;;  %1422 = vperm.xlu0 %2845, %v1228_v30   ;;  %v2503_v23 = vor.u32 %v2767_v20, %v2502_v19  ;;  %v2057_v19 = vld [vmem:[%s4364_s7 + $0xf8] sm:$0xff]  ;;  %v2056_v20 = vld [vmem:[%s4364_s7 + $0xf0] sm:$0xff] }
 0x167   :  { %1035 = vmatmul.bf16.gmra.mxu1 %v2467_v9 }
 0x16a   :  { %1447 = vperm.xlu2 %2847, %v1233_v32  }
 0x16b   :  { %1442 = vperm.xlu1 %2846, %v1232_v36   ;;  %1437 = vperm.xlu0 %2845, %v1231_v62   ;;  %v2046_v36 = vld [vmem:[%s4364_s7 + $0xa0] sm:$0xff]  ;;  %v2045_v62 = vld [vmem:[%s4364_s7 + $0x98] sm:$0xff] }
 0x16c   :  { %951 = vmatmul.bf16.gmra.mxu0 %v2471_v27  ;;  %v2044_v27 = vld [vmem:[%s4364_s7 + $0x90] sm:$0xff] }
 0x172   :  { %1462 = vperm.xlu2 %2847, %v1236_v35   ;;  %v2766_v35 = vld [vmem:[%s4363_s3 + $0x94] sm:$0xf] }
 0x173   :  { %1457 = vperm.xlu1 %2846, %v1235_v38   ;;  %1452 = vperm.xlu0 %2845, %v1234_v39   ;;  %v2504_v38 = vld [vmem:[%s4363_s3 + $0x98] sm:$0xf0] }
 0x174   :  { %v2507_v61 = vor.u32 %v2766_v35, %v2504_v38 }
 0x177   :  { %1040 = vmatmul.bf16.gmra.mxu1 %v2475_v44 }
 0x17a   :  { %1477 = vperm.xlu2 %2847, %v1239_v46  }
 0x17b   :  { %1472 = vperm.xlu1 %2846, %v1238_v48   ;;  %1467 = vperm.xlu0 %2845, %v1237_v5   ;;  %v2510_v48 = vld [vmem:[%s4363_s3 + $0xa0] sm:$0xf]  ;;  %v2769_v5 = vld [vmem:[%s4363_s3 + $0xa4] sm:$0xf0] }
 0x17c   :  { %956 = vmatmul.bf16.gmra.mxu0 %v2479_v52  ;;  %v2049_v52 = vld [vmem:[%s4364_s7 + $0xb8] sm:$0xff] }
 0x182   :  { %2086 = vperm.xlu2 %2847, %v2028_v15   ;;  %v2048_v15 = vld [vmem:[%s4364_s7 + $0xb0] sm:$0xff] }
 0x183   :  { %2081 = vperm.xlu1 %2846, %v2027_v53   ;;  %2076 = vperm.xlu0 %2845, %v2026_v58   ;;  %v2047_v53 = vld [vmem:[%s4364_s7 + $0xa8] sm:$0xff]  ;;  %v2511_v58 = vor.u32 %v2769_v5, %v2510_v48  ;;  %v2064_v5 = vld [vmem:[%s4364_s7 + $0x130] sm:$0xff] }
 0x187   :  { %1045 = vmatmul.bf16.gmra.mxu1 %v2483_v59 }
 0x18a   :  { %2101 = vperm.xlu2 %2847, %v2031_v42  }
 0x18b   :  { %2096 = vperm.xlu1 %2846, %v2030_v26   ;;  %2091 = vperm.xlu0 %2845, %v2029_v0   ;;  %v2052_v0 = vld [vmem:[%s4364_s7 + $0xd0] sm:$0xff] }
 0x18c   :  { %961 = vmatmul.bf16.gmra.mxu0 %v2487_v1  ;;  %v2051_v1 = vld [vmem:[%s4364_s7 + $0xc8] sm:$0xff] }
 0x192   :  { %2116 = vperm.xlu2 %2847, %v2034_v11   ;;  %v2050_v11 = vld [vmem:[%s4364_s7 + $0xc0] sm:$0xff] }
 0x193   :  { %2111 = vperm.xlu1 %2846, %v2033_v56   ;;  %2106 = vperm.xlu0 %2845, %v2032_v3   ;;  %v2768_v56 = vld [vmem:[%s4363_s3 + $0xa4] sm:$0xf]  ;;  %v2512_v3 = vld [vmem:[%s4363_s3 + $0xa8] sm:$0xf0] }
 0x194   :  { %v2515_v12 = vor.u32 %v2768_v56, %v2512_v3  ;;  %v2066_v56 = vld [vmem:[%s4364_s7 + $0x140] sm:$0xff]  ;;  %v2065_v3 = vld [vmem:[%s4364_s7 + $0x138] sm:$0xff] }
 0x197   :  { %1050 = vmatmul.bf16.gmra.mxu1 %v2491_v8  ;;  %v621_v8 = vpop.permute.xlu2 %620 }
 0x199   :  { %v927_v51 = vpop.f32.mrf.mxu0 }
 0x19a   :  { %v928_v7 = vadd.f32 %v927_v51, %v601_v40  ;;  %2131 = vperm.xlu2 %2847, %v2037_v57   ;;  %v2055_v40 = vld [vmem:[%s4364_s7 + $0xe8] sm:$0xff]  ;;  %v2054_v51 = vld [vmem:[%s4364_s7 + $0xe0] sm:$0xff] }
 0x19b   :  { %2126 = vperm.xlu1 %2846, %v2036_v13   ;;  %2121 = vperm.xlu0 %2845, %v2035_v28   ;;  %v2518_v28 = vld [vmem:[%s4363_s3 + $0xb0] sm:$0xf] }
 0x19c   :  { %966 = vmatmul.bf16.gmra.mxu0 %v2495_v10  ;;  %v2771_v10 = vld [vmem:[%s4363_s3 + $0xb4] sm:$0xf0] }
 0x1a1   :  { %v929_v14 = vpop.f32.mrf.mxu0 }
 0x1a2   :  { %2146 = vperm.xlu2 %2847, %v2040_v47   ;;  %v930_v31 = vadd.f32 %v929_v14, %v606_v63  ;;  %v2519_v47 = vor.u32 %v2771_v10, %v2518_v28  ;;  %v2774_v28 = vld [vmem:[%s4363_s3 + $0xd4] sm:$0xf]  ;;  %v2536_v10 = vld [vmem:[%s4363_s3 + $0xd8] sm:$0xf0] }
 0x1a3   :  { %2141 = vperm.xlu1 %2846, %v2039_v33   ;;  %2136 = vperm.xlu0 %2845, %v2038_v29   ;;  %v626_v29 = vpop.permute.xlu0 %625 }
 0x1a4   :  { %v1016_v55 = vpop.f32.mrf.mxu1 }
 0x1a5   :  { %v1017_v18 = vadd.f32 %v1016_v55, %v928_v7  ;;  %v2053_v7 = vld [vmem:[%s4364_s7 + $0xd8] sm:$0xff] }
 0x1a7   :  { %1055 = vmatmul.bf16.gmra.mxu1 %v2499_v17  ;;  %v1096_v4 = vmax.f32 %v1017_v18, 0.0  ;;  %v2058_v18 = vld [vmem:[%s4364_s7 + $0x100] sm:$0xff] }
 0x1a9   :  { %v932_v30 = vpop.f32.mrf.mxu0 }
 0x1aa   :  { %2161 = vperm.xlu2 %2847, %v2043_v24   ;;  %v933_v44 = vadd.f32 %v932_v30, %v611_v43  ;;  %v2770_v24 = vld [vmem:[%s4363_s3 + $0xb4] sm:$0xf]  ;;  %v631_v30 = vpop.permute.xlu1 %630 }
 0x1ab   :  { %2156 = vperm.xlu1 %2846, %v2042_v25   ;;  %2151 = vperm.xlu0 %2845, %v2041_v22   ;;  %v2520_v25 = vld [vmem:[%s4363_s3 + $0xb8] sm:$0xf0] }
 0x1ac   :  { %971 = vmatmul.bf16.gmra.mxu0 %v2503_v23  ;;  %v1018_v9 = vpop.f32.mrf.mxu1 }
 0x1ad   :  { %v1019_v49 = vadd.f32 %v1018_v9, %v930_v31  ;;  %v2523_v31 = vor.u32 %v2770_v24, %v2520_v25 }
 0x1af   :  { %v1097_v32 = vmax.f32 %v1019_v49, 0.0 }
 0x1b1   :  { %v934_v39 = vpop.f32.mrf.mxu0  ;;  %v3642_v16 = vpack.c.bf16 %v1097_v32, %v1096_v4  ;;  %v2526_v4 = vld [vmem:[%s4363_s3 + $0xc0] sm:$0xf]  ;;  %v2773_v32 = vld [vmem:[%s4363_s3 + $0xc4] sm:$0xf0] }
 0x1b2   :  { %2176 = vperm.xlu2 %2847, %v2046_v36   ;;  %v935_v59 = vadd.f32 %v934_v39, %v616_v41  ;;  %v2061_v36 = vld [vmem:[%s4364_s7 + $0x118] sm:$0xff]  ;;  %v2527_v35 = vor.u32 %v2773_v32, %v2526_v4  ;;  %v636_v39 = vpop.permute.xlu2 %635 }
 0x1b3   :  { %2171 = vperm.xlu1 %2846, %v2045_v62   ;;  %2166 = vperm.xlu0 %2845, %v2044_v27   ;;  %v2060_v62 = vld [vmem:[%s4364_s7 + $0x110] sm:$0xff]  ;;  %v2059_v27 = vld [vmem:[%s4364_s7 + $0x108] sm:$0xff] }
 0x1b4   :  { %v1021_v54 = vpop.f32.mrf.mxu1 }
 0x1b5   :  { %v1022_v46 = vadd.f32 %v1021_v54, %v933_v44  ;;  %v14_v44 = vstv %s4365_s8 }
 0x1b6   :  { %15 = vst [vmem:[#allocation2] sm:$0x1] %v14_v44 }
 0x1b7   :  { %1060 = vmatmul.bf16.gmra.mxu1 %v2507_v61  ;;  %v1098_v42 = vmax.f32 %v1022_v46, 0.0 }
 0x1b9   :  { %v937_v37 = vpop.f32.mrf.mxu0 }
 0x1ba   :  { %2191 = vperm.xlu2 %2847, %v2049_v52   ;;  %v938_v50 = vadd.f32 %v937_v37, %v621_v8  ;;  %v2063_v52 = vld [vmem:[%s4364_s7 + $0x128] sm:$0xff] }
 0x1bb   :  { %2186 = vperm.xlu1 %2846, %v2048_v15   ;;  %2181 = vperm.xlu0 %2845, %v2047_v53   ;;  %v2062_v15 = vld [vmem:[%s4364_s7 + $0x120] sm:$0xff] }
 0x1bc   :  { %976 = vmatmul.bf16.gmra.mxu0 %v2511_v58  ;;  %v1023_v60 = vpop.f32.mrf.mxu1  ;;  %v2772_v53 = vld [vmem:[%s4363_s3 + $0xc4] sm:$0xf]  ;;  %v2528_v58 = vld [vmem:[%s4363_s3 + $0xc8] sm:$0xf0] }
 0x1bd   :  { %v1024_v45 = vadd.f32 %v1023_v60, %v935_v59  ;;  %v641_v59 = vpop.permute.xlu0 %640 }
 0x1bf   :  { %v1099_v26 = vmax.f32 %v1024_v45, 0.0  ;;  %v2531_v45 = vor.u32 %v2772_v53, %v2528_v58 }
 0x1c1   :  { %v939_v21 = vpop.f32.mrf.mxu0  ;;  %v3674_v6 = vpack.c.bf16 %v1099_v26, %v1098_v42 }
 0x1c2   :  { %2206 = vperm.xlu2 %2847, %v2052_v0   ;;  %v940_v34 = vadd.f32 %v939_v21, %v626_v29  ;;  %v2534_v0 = vld [vmem:[%s4363_s3 + $0xd0] sm:$0xf]  ;;  %v2073_v29 = vld [vmem:[%s4364_s7 + $0x178] sm:$0xff] }
 0x1c3   :  { %2201 = vperm.xlu1 %2846, %v2051_v1   ;;  %2196 = vperm.xlu0 %2845, %v2050_v11   ;;  %v2775_v1 = vld [vmem:[%s4363_s3 + $0xd4] sm:$0xf0]  ;;  %v2067_v11 = vld [vmem:[%s4364_s7 + $0x148] sm:$0xff] }
 0x1c4   :  { %v1026_v57 = vpop.f32.mrf.mxu1  ;;  %v2535_v21 = vor.u32 %v2775_v1, %v2534_v0 }
 0x1c5   :  { %v1027_v13 = vadd.f32 %v1026_v57, %v938_v50  ;;  %v2069_v57 = vld [vmem:[%s4364_s7 + $0x158] sm:$0xff] }
 0x1c7   :  { %1065 = vmatmul.bf16.gmra.mxu1 %v2515_v12  ;;  %v1100_v17 = vmax.f32 %v1027_v13, 0.0  ;;  %v2070_v12 = vld [vmem:[%s4364_s7 + $0x160] sm:$0xff]  ;;  %v2068_v13 = vld [vmem:[%s4364_s7 + $0x150] sm:$0xff] }
 0x1c9   :  { %v942_v33 = vpop.f32.mrf.mxu0 }
 0x1ca   :  { %2221 = vperm.xlu2 %2847, %v2055_v40   ;;  %v943_v63 = vadd.f32 %v942_v33, %v631_v30  ;;  %v2777_v33 = vld [vmem:[%s4363_s3 + $0xe4] sm:$0xf0]  ;;  %v651_v30 = vpop.permute.xlu2 %650 }
 0x1cb   :  { %2216 = vperm.xlu1 %2846, %v2054_v51   ;;  %2211 = vperm.xlu0 %2845, %v2053_v7   ;;  %v2539_v51 = vor.u32 %v2774_v28, %v2536_v10 }
 0x1cc   :  { %981 = vmatmul.bf16.gmra.mxu0 %v2519_v47  ;;  %v1028_v2 = vpop.f32.mrf.mxu1  ;;  %v2542_v47 = vld [vmem:[%s4363_s3 + $0xe0] sm:$0xf] }
 0x1cd   :  { %v1029_v14 = vadd.f32 %v1028_v2, %v940_v34  ;;  %v2072_v34 = vld [vmem:[%s4364_s7 + $0x170] sm:$0xff]  ;;  %v2071_v2 = vld [vmem:[%s4364_s7 + $0x168] sm:$0xff] }
 0x1cf   :  { %v1101_v55 = vmax.f32 %v1029_v14, 0.0  ;;  %v2543_v14 = vor.u32 %v2777_v33, %v2542_v47 }
 0x1d1   :  { %v944_v22 = vpop.f32.mrf.mxu0  ;;  %v3706_v23 = vpack.c.bf16 %v1101_v55, %v1100_v17 }
 0x1d2   :  { %2236 = vperm.xlu2 %2847, %v2058_v18   ;;  %v945_v43 = vadd.f32 %v944_v22, %v636_v39  ;;  %v2415_v18 = vld [vmem:[#allocation2] sm:$0x1] }
 0x1d3   :  { %2231 = vperm.xlu1 %2846, %v2057_v19   ;;  %2226 = vperm.xlu0 %2845, %v2056_v20   ;;  %v2776_v19 = vld [vmem:[%s4363_s3 + $0xe4] sm:$0xf]  ;;  %v2544_v20 = vld [vmem:[%s4363_s3 + $0xe8] sm:$0xf0] }
 0x1d4   :  { %v1031_v9 = vpop.f32.mrf.mxu1  ;;  %v2547_v25 = vor.u32 %v2776_v19, %v2544_v20 }
 0x1d5   :  { %v1032_v49 = vadd.f32 %v1031_v9, %v943_v63  ;;  %v2550_v63 = vld [vmem:[%s4363_s3 + $0xf0] sm:$0xf]  ;;  %v646_v9 = vpop.permute.xlu1 %645 }
 0x1d7   :  { %1070 = vmatmul.bf16.gmra.mxu1 %v2523_v31  ;;  %v1102_v46 = vmax.f32 %v1032_v49, 0.0  ;;  %v2779_v31 = vld [vmem:[%s4363_s3 + $0xf4] sm:$0xf0] }
 0x1d8   :  { %v2551_v49 = vor.u32 %v2779_v31, %v2550_v63 }
 0x1d9   :  { %v947_v38 = vpop.f32.mrf.mxu0 }
 0x1da   :  { %2251 = vperm.xlu2 %2847, %v2061_v36   ;;  %v948_v60 = vadd.f32 %v947_v38, %v641_v59  ;;  %v656_v36 = vpop.permute.xlu0 %655  ;;  %v2552_v38 = vld [vmem:[%s4363_s3 + $0xf8] sm:$0xf0] }
 0x1db   :  { %2246 = vperm.xlu1 %2846, %v2060_v62   ;;  %2241 = vperm.xlu0 %2845, %v2059_v27   ;;  %v666_v62 = vpop.permute.xlu2 %665 }
 0x1dc   :  { %986 = vmatmul.bf16.gmra.mxu0 %v2527_v35  ;;  %v1033_v61 = vpop.f32.mrf.mxu1  ;;  %v2778_v35 = vld [vmem:[%s4363_s3 + $0xf4] sm:$0xf] }
 0x1dd   :  { %v1034_v54 = vadd.f32 %v1033_v61, %v945_v43  ;;  %v661_v27 = vpop.permute.xlu1 %660  ;;  %v2555_v43 = vor.u32 %v2778_v35, %v2552_v38 }
 0x1df   :  { %v1103_v48 = vmax.f32 %v1034_v54, 0.0 }
 0x1e1   :  { %v3741_v37 = vpop.f32.mrf.mxu0  ;;  %v3743_v41 = vpack.c.bf16 %v1103_v48, %v1102_v46 }
 0x1e2   :  { %2266 = vperm.xlu2 %2847, %v2064_v5   ;;  %v671_v61 = vpop.permute.xlu0 %670  ;;  %v950_v28 = vadd.f32 %v3741_v37, %v646_v9 }
 0x1e3   :  { %2261 = vperm.xlu1 %2846, %v2063_v52   ;;  %2256 = vperm.xlu0 %2845, %v2062_v15   ;;  %v681_v54 = vpop.permute.xlu2 %680 }
 0x1e4   :  { %v1036_v42 = vpop.f32.mrf.mxu1 }
 0x1e5   :  { %v3745_v26 = vadd.f32 %v1036_v42, %v948_v60  ;;  %v676_v5 = vpop.permute.xlu1 %675 }
 0x1e7   :  { %1075 = vmatmul.bf16.gmra.mxu1 %v2531_v45 }
 0x1e9   :  { %v3762_v8 = vpop.f32.mrf.mxu0 }
 0x1ea   :  { %2281 = vperm.xlu2 %2847, %v2067_v11  }
 0x1eb   :  { %2276 = vperm.xlu1 %2846, %v2066_v56   ;;  %2271 = vperm.xlu0 %2845, %v2065_v3   ;;  %v953_v3 = vadd.f32 %v3762_v8, %v651_v30 }
 0x1ec   :  { %991 = vmatmul.bf16.gmra.mxu0 %v2535_v21  ;;  %v3764_v50 = vpop.f32.mrf.mxu1 }
 0x1ed   :  { %v1039_v33 = vadd.f32 %v3764_v50, %v950_v28  ;;  %v691_v30 = vpop.permute.xlu1 %690 }
 0x1ef   :  { %v1105_v8 = vmax.f32 %v1039_v33, 0.0  ;;  %v2785_v33 = vld [vmem:[%s4366_s5 + $0x24] sm:$0xf0] }
 0x1f1   :  { %v954_v40 = vpop.f32.mrf.mxu0 }
 0x1f2   :  { %2296 = vperm.xlu2 %2847, %v2070_v12   ;;  %v955_v0 = vadd.f32 %v954_v40, %v656_v36  ;;  %v2590_v36 = vld [vmem:[%s4366_s5 + $0x40] sm:$0xf] }
 0x1f3   :  { %2291 = vperm.xlu1 %2846, %v2069_v57   ;;  %2286 = vperm.xlu0 %2845, %v2068_v13  }
 0x1f4   :  { %v1041_v7 = vpop.f32.mrf.mxu1 }
 0x1f5   :  { %v1042_v10 = vadd.f32 %v1041_v7, %v953_v3 }
 0x1f7   :  { %1080 = vmatmul.bf16.gmra.mxu1 %v2539_v51 }
 0x1f9   :  { %v957_v17 = vpop.f32.mrf.mxu0 }
 0x1fa   :  { %2311 = vperm.xlu2 %2847, %v2073_v29   ;;  %v958_v60 = vadd.f32 %v957_v17, %v661_v27 }
 0x1fb   :  { %2306 = vperm.xlu1 %2846, %v2072_v34   ;;  %2301 = vperm.xlu0 %2845, %v2071_v2   ;;  %v1106_v2 = vmax.f32 %v1042_v10, 0.0 }
 0x1fc   :  { %996 = vmatmul.bf16.gmra.mxu0 %v2543_v14  ;;  %v1043_v55 = vpop.f32.mrf.mxu1 }
 0x1fd   :  { %v1044_v21 = vadd.f32 %v1043_v55, %v955_v0  ;;  %v686_v55 = vpop.permute.xlu0 %685 }
 0x1ff   :  { %v1107_v29 = vmax.f32 %v1044_v21, 0.0 }
 0x201   :  { %v959_v24 = vpop.f32.mrf.mxu0  ;;  %v1181_v17 = vpack.c.bf16 %v1107_v29, %v1106_v2  ;;  %v2606_v29 = vld [vmem:[%s4366_s5 + $0x60] sm:$0xf] }
 0x202   :  { %v960_v15 = vadd.f32 %v959_v24, %v666_v62 }
 0x203   :  { %2418 = vperm.xlu0 %2845, %v2415_v18   ;;  %v1104_v18 = vmax.f32 %v3745_v26, 0.0 }
 0x204   :  { %v1046_v22 = vpop.f32.mrf.mxu1 }
 0x205   :  { %v1047_v1 = vadd.f32 %v1046_v22, %v958_v60  ;;  %v1180_v20 = vpack.c.bf16 %v1105_v8, %v1104_v18 }
 0x207   :  { %1085 = vmatmul.bf16.gmra.mxu1 %v2547_v25  ;;  %v1108_v51 = vmax.f32 %v1047_v1, 0.0 }
 0x209   :  { %v962_v4 = vpop.f32.mrf.mxu0 }
 0x20a   :  { %v963_v46 = vadd.f32 %v962_v4, %v671_v61  ;;  %v2558_v4 = vld [vmem:[%s4366_s5] sm:$0xf]  ;;  %v701_v61 = vpop.permute.xlu0 %700 }
 0x20c   :  { %1001 = vmatmul.bf16.gmra.mxu0 %v2551_v49  ;;  %v1048_v32 = vpop.f32.mrf.mxu1  ;;  %v696_v49 = vpop.permute.xlu2 %695 }
 0x20d   :  { %v1049_v45 = vadd.f32 %v1048_v32, %v960_v15  ;;  %v2566_v15 = vld [vmem:[%s4366_s5 + $0x10] sm:$0xf] }
 0x20f   :  { %v1109_v12 = vmax.f32 %v1049_v45, 0.0 }
 0x211   :  { %v964_v39 = vpop.f32.mrf.mxu0  ;;  %v1182_v34 = vpack.c.bf16 %v1109_v12, %v1108_v51  ;;  %v2574_v51 = vld [vmem:[%s4366_s5 + $0x20] sm:$0xf] }
 0x212   :  { %v965_v53 = vadd.f32 %v964_v39, %v676_v5  ;;  %v716_v10 = vpop.permute.xlu0 %715  ;;  %v2575_v8 = vor.u32 %v2785_v33, %v2574_v51 }
 0x214   :  { %v1051_v44 = vpop.f32.mrf.mxu1  ;;  %v711_v21 = vpop.permute.xlu2 %710 }
 0x215   :  { %v1052_v58 = vadd.f32 %v1051_v44, %v963_v46 }
 0x217   :  { %1090 = vmatmul.bf16.gmra.mxu1 %v2555_v43  ;;  %v1110_v11 = vmax.f32 %v1052_v58, 0.0  ;;  %v2598_v58 = vld [vmem:[%s4366_s5 + $0x50] sm:$0xf] }
 0x219   :  { %v967_v48 = vpop.f32.mrf.mxu0 }
 0x21a   :  { %v968_v52 = vadd.f32 %v967_v48, %v681_v54 }
 0x21c   :  { %v1053_v59 = vpop.f32.mrf.mxu1 }
 0x21d   :  { %v1054_v42 = vadd.f32 %v1053_v59, %v965_v53  ;;  %v2791_v59 = vld [vmem:[%s4366_s5 + $0x54] sm:$0xf0] }
 0x21e   :  { %v2599_v0 = vor.u32 %v2791_v59, %v2598_v58 }
 0x21f   :  { %v1111_v56 = vmax.f32 %v1054_v42, 0.0 }
 0x221   :  { %v969_v57 = vpop.f32.mrf.mxu0  ;;  %v1183_v13 = vpack.c.bf16 %v1111_v56, %v1110_v11 }
 0x222   :  { %v970_v37 = vadd.f32 %v969_v57, %v686_v55 }
 0x223   :  { %1720 = vmatpush.bf16.msrb.mxu0 %v1183_v13  ;;  %2828 = vmatpush.bf16.msra.mxu2 %v1183_v13 }
 0x224   :  { %v1056_v47 = vpop.f32.mrf.mxu1 }
 0x225   :  { %v1057_v40 = vadd.f32 %v1056_v47, %v968_v52  ;;  %v706_v52 = vpop.permute.xlu1 %705 }
 0x227   :  { %1721 = vmatpush.bf16.msrb.mxu0 %v1182_v34  ;;  %2829 = vmatpush.bf16.msra.mxu2 %v1182_v34  ;;  %v1112_v24 = vmax.f32 %v1057_v40, 0.0  ;;  %v2793_v40 = vld [vmem:[%s4366_s5 + $0x64] sm:$0xf0] }
 0x229   :  { %v972_v14 = vpop.f32.mrf.mxu0 }
 0x22a   :  { %v973_v63 = vadd.f32 %v972_v14, %v691_v30  ;;  %v2607_v14 = vor.u32 %v2793_v40, %v2606_v29  ;;  %v2787_v30 = vld [vmem:[%s4366_s5 + $0x34] sm:$0xf0] }
 0x22b   :  { %1722 = vmatpush.bf16.msrb.mxu0 %v1181_v17  ;;  %2830 = vmatpush.bf16.msra.mxu2 %v1181_v17 }
 0x22c   :  { %v1058_v7 = vpop.f32.mrf.mxu1 }
 0x22d   :  { %v1059_v19 = vadd.f32 %v1058_v7, %v970_v37  ;;  %v721_v7 = vpop.permute.xlu1 %720 }
 0x22f   :  { %v1113_v50 = vmax.f32 %v1059_v19, 0.0  ;;  %1723 = vmatpush.bf16.msrb.mxu0 %v1180_v20  ;;  %2831 = vmatpush.bf16.msra.mxu2 %v1180_v20 }
 0x231   :  { %v974_v25 = vpop.f32.mrf.mxu0  ;;  %v3818_v22 = vpack.c.bf16 %v1113_v50, %v1112_v24 }
 0x232   :  { %v975_v32 = vadd.f32 %v974_v25, %v696_v49  ;;  %v2582_v25 = vld [vmem:[%s4366_s5 + $0x30] sm:$0xf] }
 0x233   :  { %1724 = vmatpush.bf16.msrb.mxu0 %v3743_v41  ;;  %2832 = vmatpush.bf16.msra.mxu2 %v3743_v41  ;;  %v2781_v41 = vld [vmem:[%s4366_s5 + $0x4] sm:$0xf0] }
 0x234   :  { %v1061_v26 = vpop.f32.mrf.mxu1  ;;  %v2559_v35 = vor.u32 %v2781_v41, %v2558_v4 }
 0x235   :  { %v1062_v31 = vadd.f32 %v1061_v26, %v973_v63  ;;  %v2614_v63 = vld [vmem:[%s4366_s5 + $0x70] sm:$0xf]  ;;  %v2795_v26 = vld [vmem:[%s4366_s5 + $0x74] sm:$0xf0] }
 0x236   :  { %v2615_v49 = vor.u32 %v2795_v26, %v2614_v63 }
 0x237   :  { %1725 = vmatpush.bf16.msrb.mxu0 %v3706_v23  ;;  %2833 = vmatpush.bf16.msra.mxu2 %v3706_v23  ;;  %v2789_v23 = vld [vmem:[%s4366_s5 + $0x44] sm:$0xf0]  ;;  %v1114_v39 = vmax.f32 %v1062_v31, 0.0 }
 0x238   :  { %v2591_v38 = vor.u32 %v2789_v23, %v2590_v36  ;;  %v2622_v36 = vld [vmem:[%s4366_s5 + $0x80] sm:$0xf]  ;;  %v2797_v23 = vld [vmem:[%s4366_s5 + $0x84] sm:$0xf0] }
 0x239   :  { %v977_v9 = vpop.f32.mrf.mxu0 }
 0x23a   :  { %v978_v54 = vadd.f32 %v977_v9, %v701_v61  ;;  %v2583_v9 = vor.u32 %v2787_v30, %v2582_v25  ;;  %v2803_v30 = vld [vmem:[%s4366_s5 + $0xb4] sm:$0xf0] }
 0x23b   :  { %1726 = vmatpush.bf16.msrb.mxu0 %v3674_v6  ;;  %2834 = vmatpush.bf16.msra.mxu2 %v3674_v6 }
 0x23c   :  { %v1063_v62 = vpop.f32.mrf.mxu1 }
 0x23d   :  { %v1064_v27 = vadd.f32 %v1063_v62, %v975_v32 }
 0x23f   :  { %v1115_v43 = vmax.f32 %v1064_v27, 0.0  ;;  %1727 = vmatpush.bf16.msrb.mxu0 %v3642_v16  ;;  %2835 = vmatpush.bf16.msra.mxu2 %v3642_v16  ;;  %v2783_v16 = vld [vmem:[%s4366_s5 + $0x14] sm:$0xf0]  ;;  %v2623_v27 = vor.u32 %v2797_v23, %v2622_v36 }
 0x240   :  { %v2567_v42 = vor.u32 %v2783_v16, %v2566_v15 }
 0x241   :  { %v979_v6 = vpop.f32.mrf.mxu0  ;;  %v3840_v44 = vpack.c.bf16 %v1115_v43, %v1114_v39  ;;  %v726_v39 = vpop.permute.xlu2 %725  ;;  %v2630_v43 = vld [vmem:[%s4366_s5 + $0x90] sm:$0xf] }
 0x242   :  { %1728 = vmatmul.bf16.vlgmr.msrb.gmra.mxu0 %v2559_v35  ;;  %1748 = vmatmul.bf16.vlgmr.msra.gmra.mxu2 %v2591_v38  ;;  %v980_v53 = vadd.f32 %v979_v6, %v706_v52  ;;  %v2799_v6 = vld [vmem:[%s4366_s5 + $0x94] sm:$0xf0]  ;;  %v731_v52 = vpop.permute.xlu0 %730 }
 0x244   :  { %v1066_v46 = vpop.f32.mrf.mxu1 }
 0x245   :  { %v1067_v48 = vadd.f32 %v1066_v46, %v978_v54  ;;  %v736_v54 = vpop.permute.xlu1 %735 }
 0x247   :  { %v1116_v1 = vmax.f32 %v1067_v48, 0.0  ;;  %v2631_v48 = vor.u32 %v2799_v6, %v2630_v43  ;;  %v2568_v43 = vld [vmem:[%s4366_s5 + $0x18] sm:$0xf0]  ;;  %v2790_v6 = vld [vmem:[%s4366_s5 + $0x54] sm:$0xf] }
 0x249   :  { %v982_v5 = vpop.f32.mrf.mxu0 }
 0x24a   :  { %v983_v12 = vadd.f32 %v982_v5, %v711_v21  ;;  %v741_v5 = vpop.permute.xlu2 %740 }
 0x24c   :  { %v1068_v60 = vpop.f32.mrf.mxu1 }
 0x24d   :  { %v1069_v45 = vadd.f32 %v1068_v60, %v980_v53  ;;  %v751_v53 = vpop.permute.xlu1 %750  ;;  %v746_v60 = vpop.permute.xlu0 %745 }
 0x24f   :  { %v1117_v11 = vmax.f32 %v1069_v45, 0.0 }
 0x251   :  { %v984_v56 = vpop.f32.mrf.mxu0  ;;  %v3854_v3 = vpack.c.bf16 %v1117_v11, %v1116_v1  ;;  %v2638_v1 = vld [vmem:[%s4366_s5 + $0xa0] sm:$0xf]  ;;  %v2801_v11 = vld [vmem:[%s4366_s5 + $0xa4] sm:$0xf0] }
 0x252   :  { %1733 = vmatmul.bf16.gmra.mxu0 %v2567_v42  ;;  %1753 = vmatmul.bf16.gmra.mxu2 %v2599_v0  ;;  %v985_v47 = vadd.f32 %v984_v56, %v716_v10  ;;  %v756_v59 = vpop.permute.xlu2 %755 }
 0x254   :  { %v1071_v57 = vpop.f32.mrf.mxu1 }
 0x255   :  { %v1072_v13 = vadd.f32 %v1071_v57, %v983_v12 }
 0x257   :  { %v1118_v17 = vmax.f32 %v1072_v13, 0.0  ;;  %v2639_v13 = vor.u32 %v2801_v11, %v2638_v1  ;;  %v2608_v1 = vld [vmem:[%s4366_s5 + $0x68] sm:$0xf0] }
 0x259   :  { %v987_v28 = vpop.f32.mrf.mxu0 }
 0x25a   :  { %v988_v19 = vadd.f32 %v987_v28, %v721_v7  ;;  %v3942_v23 = vpop.permute.xlu2 %1252 }
 0x25c   :  { %v1073_v34 = vpop.f32.mrf.mxu1 }
 0x25d   :  { %v1074_v2 = vadd.f32 %v1073_v34, %v985_v47 }
 0x25f   :  { %v1119_v55 = vmax.f32 %v1074_v2, 0.0 }
 0x261   :  { %v3868_v18 = vpop.f32.mrf.mxu0  ;;  %v3870_v37 = vpack.c.bf16 %v1119_v55, %v1118_v17 }
 0x262   :  { %1738 = vmatmul.bf16.gmra.mxu0 %v2575_v8  ;;  %1758 = vmatmul.bf16.gmra.mxu2 %v2607_v14  ;;  %v990_v2 = vadd.f32 %v3868_v18, %v726_v39  ;;  %v2646_v18 = vld [vmem:[%s4366_s5 + $0xb0] sm:$0xf]  ;;  %v2782_v39 = vld [vmem:[%s4366_s5 + $0x14] sm:$0xf] }
 0x263   :  { %v2647_v26 = vor.u32 %v2803_v30, %v2646_v18  ;;  %v2686_v18 = vld [vmem:[%s4366_s5 + $0x100] sm:$0xf]  ;;  %v2813_v30 = vld [vmem:[%s4366_s5 + $0x104] sm:$0xf0] }
 0x264   :  { %v1076_v20 = vpop.f32.mrf.mxu1 }
 0x265   :  { %v3872_v24 = vadd.f32 %v1076_v20, %v988_v19 }
 0x269   :  { %v992_v50 = vpop.f32.mrf.mxu0 }
 0x26a   :  { %v993_v33 = vadd.f32 %v992_v50, %v731_v52  ;;  %v1120_v50 = vmax.f32 %v3872_v24, 0.0  ;;  %v3916_v24 = vpop.permute.xlu0 %1242 }
 0x26c   :  { %v1078_v31 = vpop.f32.mrf.mxu1 }
 0x26d   :  { %v1079_v17 = vadd.f32 %v1078_v31, %v990_v2  ;;  %v2654_v31 = vld [vmem:[%s4366_s5 + $0xc0] sm:$0xf]  ;;  %v2616_v2 = vld [vmem:[%s4366_s5 + $0x78] sm:$0xf0] }
 0x26f   :  { %v1121_v20 = vmax.f32 %v1079_v17, 0.0 }
 0x271   :  { %v994_v4 = vpop.f32.mrf.mxu0  ;;  %v1188_v63 = vpack.c.bf16 %v1121_v20, %v1120_v50 }
 0x272   :  { %1743 = vmatmul.bf16.gmra.mxu0 %v2583_v9  ;;  %1763 = vmatmul.bf16.gmra.mxu2 %v2615_v49  ;;  %v995_v28 = vadd.f32 %v994_v4, %v736_v54  ;;  %v3921_v9 = vpop.permute.xlu1 %1247  ;;  %v2560_v49 = vld [vmem:[%s4366_s5 + $0x8] sm:$0xf0]  ;;  %v2788_v4 = vld [vmem:[%s4366_s5 + $0x44] sm:$0xf] }
 0x274   :  { %v1081_v32 = vpop.f32.mrf.mxu1 }
 0x275   :  { %v1082_v8 = vadd.f32 %v1081_v32, %v993_v33  ;;  %v2811_v33 = vld [vmem:[%s4366_s5 + $0xf4] sm:$0xf0] }
 0x277   :  { %v1122_v19 = vmax.f32 %v1082_v8, 0.0 }
 0x279   :  { %v997_v41 = vpop.f32.mrf.mxu0 }
 0x27a   :  { %v998_v21 = vadd.f32 %v997_v41, %v741_v5 }
 0x27c   :  { %v1083_v62 = vpop.f32.mrf.mxu1 }
 0x27d   :  { %v1084_v29 = vadd.f32 %v1083_v62, %v995_v28  ;;  %v3944_v62 = vpop.permute.xlu0 %1257 }
 0x27f   :  { %v1123_v55 = vmax.f32 %v1084_v29, 0.0  ;;  %v2786_v29 = vld [vmem:[%s4366_s5 + $0x34] sm:$0xf] }
 0x281   :  { %v999_v35 = vpop.f32.mrf.mxu0  ;;  %v1189_v25 = vpack.c.bf16 %v1123_v55, %v1122_v19 }
 0x282   :  { %1768 = vmatmul.bf16.gmra.mxu2 %v2623_v27  ;;  %v1000_v45 = vadd.f32 %v999_v35, %v746_v60  ;;  %v3946_v27 = vpop.permute.xlu1 %1262  ;;  %v3948_v35 = vpop.permute.xlu2 %1267  ;;  %v2784_v60 = vld [vmem:[%s4366_s5 + $0x24] sm:$0xf] }
 0x284   :  { %v1086_v38 = vpop.f32.mrf.mxu1 }
 0x285   :  { %v1087_v10 = vadd.f32 %v1086_v38, %v998_v21  ;;  %v2662_v38 = vld [vmem:[%s4366_s5 + $0xd0] sm:$0xf]  ;;  %v3968_v54 = vpop.permute.xlu0 %1272 }
 0x287   :  { %v1124_v14 = vmax.f32 %v1087_v10, 0.0 }
 0x289   :  { %v1002_v46 = vpop.f32.mrf.mxu0 }
 0x28a   :  { %v1003_v58 = vadd.f32 %v1002_v46, %v751_v53  ;;  %v3970_v5 = vpop.permute.xlu1 %1277 }
 0x28c   :  { %v1088_v61 = vpop.f32.mrf.mxu1 }
 0x28d   :  { %v1089_v12 = vadd.f32 %v1088_v61, %v1000_v45  ;;  %v2600_v61 = vld [vmem:[%s4366_s5 + $0x58] sm:$0xf0]  ;;  %v3974_v53 = vpop.permute.xlu0 %1287  ;;  %v2576_v45 = vld [vmem:[%s4366_s5 + $0x28] sm:$0xf0] }
 0x28e   :  { %v2603_v52 = vor.u32 %v2790_v6, %v2600_v61  ;;  %v2579_v21 = vor.u32 %v2784_v60, %v2576_v45  ;;  %v2702_v45 = vld [vmem:[%s4366_s5 + $0x120] sm:$0xf] }
 0x28f   :  { %v1125_v40 = vmax.f32 %v1089_v12, 0.0 }
 0x291   :  { %v1004_v16 = vpop.f32.mrf.mxu0  ;;  %v1190_v7 = vpack.c.bf16 %v1125_v40, %v1124_v14  ;;  %v2584_v40 = vld [vmem:[%s4366_s5 + $0x38] sm:$0xf0] }
 0x292   :  { %1773 = vmatmul.bf16.gmra.mxu2 %v2631_v48  ;;  %v1005_v42 = vadd.f32 %v1004_v16, %v756_v59  ;;  %v2571_v48 = vor.u32 %v2782_v39, %v2568_v43  ;;  %v3976_v16 = vpop.permute.xlu1 %1292  ;;  %v2809_v59 = vld [vmem:[%s4366_s5 + $0xe4] sm:$0xf0]  ;;  %v2587_v17 = vor.u32 %v2786_v29, %v2584_v40  ;;  %v2798_v39 = vld [vmem:[%s4366_s5 + $0x94] sm:$0xf]  ;;  %v2632_v43 = vld [vmem:[%s4366_s5 + $0x98] sm:$0xf0] }
 0x294   :  { %v1091_v15 = vpop.f32.mrf.mxu1 }
 0x295   :  { %v1092_v0 = vadd.f32 %v1091_v15, %v1003_v58  ;;  %v3972_v15 = vpop.permute.xlu2 %1282  ;;  %v2670_v58 = vld [vmem:[%s4366_s5 + $0xe0] sm:$0xf] }
 0x297   :  { %v1126_v51 = vmax.f32 %v1092_v0, 0.0  ;;  %v2792_v0 = vld [vmem:[%s4366_s5 + $0x64] sm:$0xf] }
 0x298   :  { %v2611_v12 = vor.u32 %v2792_v0, %v2608_v1  ;;  %v2817_v0 = vld [vmem:[%s4366_s5 + $0x124] sm:$0xf0]  ;;  %v2800_v1 = vld [vmem:[%s4366_s5 + $0xa4] sm:$0xf] }
 0x29c   :  { %v1093_v56 = vpop.f32.mrf.mxu1 }
 0x29d   :  { %v1094_v57 = vadd.f32 %v1093_v56, %v1005_v42  ;;  %v3998_v11 = vpop.permute.xlu2 %1297  ;;  %v2671_v56 = vor.u32 %v2809_v59, %v2670_v58 }
 0x29f   :  { %v1127_v47 = vmax.f32 %v1094_v57, 0.0  ;;  %v4000_v57 = vpop.permute.xlu0 %1302 }
 0x2a1   :  { %v1191_v34 = vpack.c.bf16 %v1127_v47, %v1126_v51  ;;  %v2678_v51 = vld [vmem:[%s4366_s5 + $0xf0] sm:$0xf] }
 0x2a2   :  { %1778 = vmatmul.bf16.gmra.mxu2 %v2639_v13  ;;  %v4002_v13 = vpop.permute.xlu1 %1307  ;;  %v2679_v14 = vor.u32 %v2811_v33, %v2678_v51 }
 0x2a3   :  { %1849 = vmatpush.bf16.msrb.mxu1 %v1191_v34  ;;  %2836 = vmatpush.bf16.msra.mxu3 %v1191_v34  ;;  %v2794_v34 = vld [vmem:[%s4366_s5 + $0x74] sm:$0xf] }
 0x2a4   :  { %v2619_v55 = vor.u32 %v2794_v34, %v2616_v2 }
 0x2a5   :  { %v4006_v10 = vpop.permute.xlu2 %1312 }
 0x2a7   :  { %1850 = vmatpush.bf16.msrb.mxu1 %v1190_v7  ;;  %2837 = vmatpush.bf16.msra.mxu3 %v1190_v7  ;;  %v4011_v47 = vpop.permute.xlu0 %1317 }
 0x2aa   :  { %v4028_v8 = vpop.permute.xlu1 %1322 }
 0x2ab   :  { %1851 = vmatpush.bf16.msrb.mxu1 %v1189_v25  ;;  %2838 = vmatpush.bf16.msra.mxu3 %v1189_v25 }
 0x2ad   :  { %v4032_v19 = vpop.permute.xlu2 %1327 }
 0x2af   :  { %1852 = vmatpush.bf16.msrb.mxu1 %v1188_v63  ;;  %2839 = vmatpush.bf16.msra.mxu3 %v1188_v63  ;;  %v4034_v20 = vpop.permute.xlu0 %1332 }
 0x2b2   :  { %1783 = vmatmul.bf16.gmra.mxu2 %v2647_v26  ;;  %v4036_v25 = vpop.permute.xlu1 %1337  ;;  %v2796_v26 = vld [vmem:[%s4366_s5 + $0x84] sm:$0xf] }
 0x2b3   :  { %1853 = vmatpush.bf16.msrb.mxu1 %v3870_v37  ;;  %2840 = vmatpush.bf16.msra.mxu3 %v3870_v37  ;;  %v2805_v37 = vld [vmem:[%s4366_s5 + $0xc4] sm:$0xf0] }
 0x2b4   :  { %v2655_v32 = vor.u32 %v2805_v37, %v2654_v31  ;;  %v2624_v31 = vld [vmem:[%s4366_s5 + $0x88] sm:$0xf0]  ;;  %v2687_v37 = vor.u32 %v2813_v30, %v2686_v18  ;;  %v2802_v18 = vld [vmem:[%s4366_s5 + $0xb4] sm:$0xf]  ;;  %v2648_v30 = vld [vmem:[%s4366_s5 + $0xb8] sm:$0xf0] }
 0x2b5   :  { %v4046_v63 = vpop.permute.xlu2 %1342 }
 0x2b7   :  { %1854 = vmatpush.bf16.msrb.mxu1 %v3854_v3  ;;  %2841 = vmatpush.bf16.msra.mxu3 %v3854_v3  ;;  %v2780_v3 = vld [vmem:[%s4366_s5 + $0x4] sm:$0xf] }
 0x2b8   :  { %v2563_v41 = vor.u32 %v2780_v3, %v2560_v49  ;;  %v4054_v3 = vpop.permute.xlu0 %1347  ;;  %v2627_v49 = vor.u32 %v2796_v26, %v2624_v31 }
 0x2bb   :  { %1855 = vmatpush.bf16.msrb.mxu1 %v3840_v44  ;;  %2842 = vmatpush.bf16.msra.mxu3 %v3840_v44  ;;  %v2592_v44 = vld [vmem:[%s4366_s5 + $0x48] sm:$0xf0] }
 0x2bc   :  { %v2595_v36 = vor.u32 %v2788_v4, %v2592_v44  ;;  %v4056_v4 = vpop.permute.xlu1 %1352 }
 0x2bf   :  { %1856 = vmatpush.bf16.msrb.mxu1 %v3818_v22  ;;  %2843 = vmatpush.bf16.msra.mxu3 %v3818_v22  ;;  %v2807_v22 = vld [vmem:[%s4366_s5 + $0xd4] sm:$0xf0]  ;;  %v4128_v26 = vpop.f32.mrf.mxu0 }
 0x2c0   :  { %v2663_v46 = vor.u32 %v2807_v22, %v2662_v38  ;;  %v2694_v38 = vld [vmem:[%s4366_s5 + $0x110] sm:$0xf]  ;;  %v2815_v22 = vld [vmem:[%s4366_s5 + $0x114] sm:$0xf0] }
 0x2c1   :  { %v2695_v61 = vor.u32 %v2815_v22, %v2694_v38 }
 0x2c2   :  { %1788 = vmatmul.bf16.gmra.mxu2 %v2655_v32  ;;  %1857 = vmatmul.bf16.vlgmr.msrb.gmra.mxu1 %v2563_v41  ;;  %v4060_v32 = vpop.permute.xlu2 %1357  ;;  %v4062_v41 = vpop.permute.xlu0 %1362 }
 0x2c3   :  { %1877 = vmatmul.bf16.vlgmr.msra.gmra.mxu3 %v2595_v36  ;;  %4368 = vst [vmem:[#allocation3_spill] sm:$0xff] %v4062_v41 }
 0x2c4   :  { %v4064_v36 = vpop.permute.xlu1 %1367 }
 0x2c5   :  { %v3990_v42 = vpop.f32.mrf.mxu2  ;;  %4369 = vst [vmem:[#allocation4_spill] sm:$0xff] %v4064_v36 }
 0x2cc   :  { %v4084_v58 = vpop.permute.xlu1 %1382 }
 0x2cd   :  { %v4004_v28 = vpop.f32.mrf.mxu2  ;;  %4372 = vst [vmem:[#allocation7_spill] sm:$0xff] %v4084_v58 }
 0x2d2   :  { %1793 = vmatmul.bf16.gmra.mxu2 %v2663_v46  ;;  %1862 = vmatmul.bf16.gmra.mxu1 %v2571_v48  ;;  %v2635_v46 = vor.u32 %v2798_v39, %v2632_v43  ;;  %v4080_v48 = vpop.permute.xlu2 %1372  ;;  %v4138_v43 = vpop.f32.mrf.mxu0 }
 0x2d3   :  { %1882 = vmatmul.bf16.gmra.mxu3 %v2603_v52  ;;  %4370 = vst [vmem:[#allocation5_spill] sm:$0xff] %v4080_v48  ;;  %v4082_v52 = vpop.permute.xlu0 %1377  ;;  %v1732_v58 = vadd.f32 %v4138_v43, %v3921_v9 }
 0x2d4   :  { %4371 = vst [vmem:[#allocation6_spill] sm:$0xff] %v4082_v52  ;;  %v4104_v51 = vpop.permute.xlu1 %1397 }
 0x2d5   :  { %v4030_v7 = vpop.f32.mrf.mxu2  ;;  %4375 = vst [vmem:[#allocation10_spill] sm:$0xff] %v4104_v51 }
 0x2da   :  { %v4088_v60 = vpop.permute.xlu2 %1387 }
 0x2db   :  { %4373 = vst [vmem:[#allocation8_spill] sm:$0xff] %v4088_v60 }
 0x2dc   :  { %v4112_v2 = vpop.permute.xlu1 %1412 }
 0x2dd   :  { %v4038_v50 = vpop.f32.mrf.mxu2  ;;  %4378 = vst [vmem:[#allocation13_spill] sm:$0xff] %v4112_v2 }
 0x2e2   :  { %1798 = vmatmul.bf16.gmra.mxu2 %v2671_v56  ;;  %1867 = vmatmul.bf16.gmra.mxu1 %v2579_v21  ;;  %v2640_v56 = vld [vmem:[%s4366_s5 + $0xa8] sm:$0xf0]  ;;  %v4102_v21 = vpop.permute.xlu0 %1392  ;;  %v4108_v40 = vpop.permute.xlu2 %1402 }
 0x2e3   :  { %1887 = vmatmul.bf16.gmra.mxu3 %v2611_v12  ;;  %4374 = vst [vmem:[#allocation9_spill] sm:$0xff] %v4102_v21  ;;  %v2703_v12 = vor.u32 %v2817_v0, %v2702_v45  ;;  %v2643_v33 = vor.u32 %v2800_v1, %v2640_v56  ;;  %v2718_v45 = vld [vmem:[%s4366_s5 + $0x140] sm:$0xf]  ;;  %v2821_v0 = vld [vmem:[%s4366_s5 + $0x144] sm:$0xf0] }
 0x2e4   :  { %4376 = vst [vmem:[#allocation11_spill] sm:$0xff] %v4108_v40  ;;  %v4134_v22 = vpop.permute.xlu1 %1427  ;;  %v2804_v1 = vld [vmem:[%s4366_s5 + $0xc4] sm:$0xf]  ;;  %v2656_v56 = vld [vmem:[%s4366_s5 + $0xc8] sm:$0xf0] }
 0x2e5   :  { %v4058_v44 = vpop.f32.mrf.mxu2  ;;  %4381 = vst [vmem:[#allocation16_spill] sm:$0xff] %v4134_v22 }
 0x2ea   :  { %v4110_v34 = vpop.permute.xlu0 %1407  ;;  %v4130_v31 = vpop.permute.xlu2 %1417 }
 0x2eb   :  { %4377 = vst [vmem:[#allocation12_spill] sm:$0xff] %v4110_v34  ;;  %v1755_v34 = vadd.f32 %v4030_v7, %v3976_v16  ;;  %v2808_v16 = vld [vmem:[%s4366_s5 + $0xe4] sm:$0xf]  ;;  %v2672_v7 = vld [vmem:[%s4366_s5 + $0xe8] sm:$0xf0] }
 0x2ec   :  { %4379 = vst [vmem:[#allocation14_spill] sm:$0xff] %v4130_v31 }
 0x2ed   :  { %v4078_v6 = vpop.f32.mrf.mxu2 }
 0x2f2   :  { %1803 = vmatmul.bf16.gmra.mxu2 %v2679_v14  ;;  %1872 = vmatmul.bf16.gmra.mxu1 %v2587_v17  ;;  %v2710_v14 = vld [vmem:[%s4366_s5 + $0x130] sm:$0xf]  ;;  %v2819_v17 = vld [vmem:[%s4366_s5 + $0x134] sm:$0xf0]  ;;  %v4132_v38 = vpop.permute.xlu0 %1422 }
 0x2f3   :  { %1892 = vmatmul.bf16.gmra.mxu3 %v2619_v55  ;;  %4380 = vst [vmem:[#allocation15_spill] sm:$0xff] %v4132_v38 }
 0x2f5   :  { %v4086_v59 = vpop.f32.mrf.mxu2 }
 0x2fd   :  { %v4106_v29 = vpop.f32.mrf.mxu2 }
 0x302   :  { %1808 = vmatmul.bf16.gmra.mxu2 %v2687_v37  ;;  %v2711_v37 = vor.u32 %v2819_v17, %v2710_v14  ;;  %v2659_v17 = vor.u32 %v2804_v1, %v2656_v56  ;;  %v2726_v56 = vld [vmem:[%s4366_s5 + $0x150] sm:$0xf] }
 0x303   :  { %1897 = vmatmul.bf16.gmra.mxu3 %v2627_v49  ;;  %v2651_v49 = vor.u32 %v2802_v18, %v2648_v30  ;;  %v1734_v30 = vpop.f32.mrf.mxu0 }
 0x305   :  { %v4120_v55 = vpop.f32.mrf.mxu2 }
 0x30b   :  { %v1736_v1 = vpop.f32.mrf.mxu0 }
 0x30d   :  { %v4136_v39 = vpop.f32.mrf.mxu2 }
 0x312   :  { %1813 = vmatmul.bf16.gmra.mxu2 %v2695_v61  ;;  %v4140_v61 = vpop.permute.xlu2 %1432 }
 0x313   :  { %1902 = vmatmul.bf16.gmra.mxu3 %v2635_v46  ;;  %4382 = vst [vmem:[#allocation17_spill] sm:$0xff] %v4140_v61  ;;  %v4142_v46 = vpop.permute.xlu0 %1437  ;;  %v1739_v40 = vpop.f32.mrf.mxu0 }
 0x314   :  { %4383 = vst [vmem:[#allocation18_spill] sm:$0xff] %v4142_v46  ;;  %v1750_v46 = vadd.f32 %v3990_v42, %v3972_v15  ;;  %v2806_v15 = vld [vmem:[%s4366_s5 + $0xd4] sm:$0xf]  ;;  %v2664_v42 = vld [vmem:[%s4366_s5 + $0xd8] sm:$0xf0] }
 0x315   :  { %v4160_v18 = vpop.f32.mrf.mxu2  ;;  %v2667_v31 = vor.u32 %v2806_v15, %v2664_v42  ;;  %v2734_v15 = vld [vmem:[%s4366_s5 + $0x160] sm:$0xf] }
 0x322   :  { %1818 = vmatmul.bf16.gmra.mxu2 %v2703_v12  ;;  %v4156_v12 = vpop.permute.xlu1 %1442 }
 0x323   :  { %1907 = vmatmul.bf16.gmra.mxu3 %v2643_v33  ;;  %4384 = vst [vmem:[#allocation19_spill] sm:$0xff] %v4156_v12  ;;  %v2719_v33 = vor.u32 %v2821_v0, %v2718_v45  ;;  %v4172_v0 = vpop.f32.mrf.mxu2 }
 0x32a   :  { %v4168_v22 = vpop.permute.xlu1 %1457 }
 0x32b   :  { %4387 = vst [vmem:[#allocation22_spill] sm:$0xff] %v4168_v22  ;;  %v4196_v2 = vpop.f32.mrf.mxu2 }
 0x332   :  { %1823 = vmatmul.bf16.gmra.mxu2 %v2711_v37  ;;  %v4162_v37 = vpop.permute.xlu2 %1447 }
 0x333   :  { %1912 = vmatmul.bf16.gmra.mxu3 %v2651_v49  ;;  %4385 = vst [vmem:[#allocation20_spill] sm:$0xff] %v4162_v37  ;;  %v4164_v49 = vpop.permute.xlu0 %1452 }
 0x334   :  { %4386 = vst [vmem:[#allocation21_spill] sm:$0xff] %v4164_v49 }
 0x33b   :  { %v4190_v49 = vpop.permute.xlu0 %1467 }
 0x33c   :  { %4389 = vst [vmem:[#allocation24_spill] sm:$0xff] %v4190_v49  ;;  %v2675_v49 = vor.u32 %v2808_v16, %v2672_v7  ;;  %v1737_v7 = vadd.f32 %v1736_v1, %v3944_v62 }
 0x33f   :  { %v4158_v14 = vpop.f32.mrf.mxu1 }
 0x342   :  { %1828 = vmatmul.bf16.gmra.mxu2 %v2719_v33  ;;  %v2823_v33 = vld [vmem:[%s4366_s5 + $0x154] sm:$0xf0] }
 0x343   :  { %1917 = vmatmul.bf16.gmra.mxu3 %v2659_v17  ;;  %v4180_v17 = vpop.permute.xlu2 %1462  ;;  %v2727_v22 = vor.u32 %v2823_v33, %v2726_v56  ;;  %v2077_v33 = vpop.permute.xlu0 %2076 }
 0x344   :  { %4388 = vst [vmem:[#allocation23_spill] sm:$0xff] %v4180_v17  ;;  %v4194_v17 = vpop.permute.xlu1 %1472 }
 0x345   :  { %4390 = vst [vmem:[#allocation25_spill] sm:$0xff] %v4194_v17 }
 0x346   :  { %v1878_v61 = vpop.f32.mrf.mxu3 }
 0x347   :  { %v4170_v12 = vadd.f32 %v1878_v61, %v1750_v46  ;;  %v1860_v45 = vpop.f32.mrf.mxu1  ;;  %v1752_v61 = vadd.f32 %v4004_v28, %v3974_v53 }
 0x34b   :  { %v4200_v51 = vpop.permute.xlu2 %1477  ;;  %v2092_v60 = vpop.permute.xlu0 %2091 }
 0x34c   :  { %4391 = vst [vmem:[#allocation26_spill] sm:$0xff] %v4200_v51 }
 0x34e   :  { %v1880_v46 = vpop.f32.mrf.mxu3 }
 0x34f   :  { %v4192_v37 = vadd.f32 %v1880_v46, %v1752_v61  ;;  %v1863_v38 = vpop.f32.mrf.mxu1  ;;  %v2082_v61 = vpop.permute.xlu1 %2081 }
 0x352   :  { %1833 = vmatmul.bf16.gmra.mxu2 %v2727_v22  ;;  %v4218_v22 = vpop.f32.mrf.mxu2 }
 0x353   :  { %1922 = vmatmul.bf16.gmra.mxu3 %v2667_v31  ;;  %v2825_v31 = vld [vmem:[%s4366_s5 + $0x164] sm:$0xf0]  ;;  %v2087_v21 = vpop.permute.xlu2 %2086 }
 0x354   :  { %v2735_v46 = vor.u32 %v2825_v31, %v2734_v15  ;;  %v1735_v15 = vadd.f32 %v1734_v30, %v3942_v23  ;;  %v1861_v31 = vadd.f32 %v1860_v45, %v1732_v58  ;;  %v2742_v23 = vld [vmem:[%s4366_s5 + $0x170] sm:$0xf]  ;;  %v2827_v58 = vld [vmem:[%s4366_s5 + $0x174] sm:$0xf0]  ;;  %v1762_v45 = vadd.f32 %v4078_v6, %v4002_v13 }
 0x356   :  { %v1883_v53 = vpop.f32.mrf.mxu3  ;;  %v1864_v43 = vadd.f32 %v1863_v38, %v1735_v15  ;;  %v2810_v38 = vld [vmem:[%s4366_s5 + $0xf4] sm:$0xf] }
 0x357   :  { %v4202_v28 = vadd.f32 %v1883_v53, %v1755_v34  ;;  %v1865_v56 = vpop.f32.mrf.mxu1  ;;  %v1757_v34 = vadd.f32 %v4038_v50, %v3998_v11  ;;  %v1741_v53 = vpop.f32.mrf.mxu0  ;;  %v1760_v11 = vadd.f32 %v4058_v44, %v4000_v57  ;;  %v1730_v50 = vadd.f32 %v4128_v26, %v3916_v24 }
 0x358   :  { %v2097_v52 = vpop.permute.xlu1 %2096  ;;  %v1740_v57 = vadd.f32 %v1739_v40, %v3946_v27  ;;  %v1979_v44 = vmax.f32 %v1861_v31, 0.0  ;;  %v1866_v24 = vadd.f32 %v1865_v56, %v1737_v7  ;;  %v1742_v62 = vadd.f32 %v1741_v53, %v3948_v35  ;;  %v2680_v27 = vld [vmem:[%s4366_s5 + $0xf8] sm:$0xf0]  ;;  %v2107_v40 = vpop.permute.xlu0 %2106 }
 0x359   :  { %v1859_v9 = vadd.f32 %v4158_v14, %v1730_v50  ;;  %v1980_v30 = vmax.f32 %v1864_v43, 0.0  ;;  %v2743_v50 = vor.u32 %v2827_v58, %v2742_v23 }
 0x35a   :  { %v2315_v56 = vmul.f32 %v2082_v61, %v1979_v44 }
 0x35b   :  { %v2102_v48 = vpop.permute.xlu2 %2101  ;;  %v1978_v26 = vmax.f32 %v1859_v9, 0.0  ;;  %v2316_v9 = vmul.f32 %v2087_v21, %v1980_v30 }
 0x35d   :  { %v2314_v7 = vmul.f32 %v2077_v33, %v1978_v26 }
 0x35e   :  { %v1885_v42 = vpop.f32.mrf.mxu3 }
 0x35f   :  { %v4220_v51 = vadd.f32 %v1885_v42, %v1757_v34  ;;  %v1868_v17 = vpop.f32.mrf.mxu1  ;;  %v2362_v41 = vadd.f32 %v2315_v56, %v2314_v7 }
 0x360   :  { %v1869_v14 = vadd.f32 %v1868_v17, %v1740_v57  ;;  %v2112_v17 = vpop.permute.xlu1 %2111 }
 0x362   :  { %1838 = vmatmul.bf16.gmra.mxu2 %v2735_v46  ;;  %v1744_v46 = vpop.f32.mrf.mxu0  ;;  %v1982_v43 = vmax.f32 %v1869_v14, 0.0 }
 0x363   :  { %1927 = vmatmul.bf16.gmra.mxu3 %v2675_v49  ;;  %v4232_v49 = vpop.f32.mrf.mxu2  ;;  %v1745_v1 = vadd.f32 %v1744_v46, %v3968_v54  ;;  %v2117_v61 = vpop.permute.xlu2 %2116 }
 0x364   :  { %v2318_v46 = vmul.f32 %v2097_v52, %v1982_v43 }
 0x366   :  { %v1888_v34 = vpop.f32.mrf.mxu3 }
 0x367   :  { %v4229_v42 = vadd.f32 %v1888_v34, %v1760_v11  ;;  %v1870_v16 = vpop.f32.mrf.mxu1  ;;  %v1981_v11 = vmax.f32 %v1866_v24, 0.0  ;;  %v2683_v34 = vor.u32 %v2810_v38, %v2680_v27  ;;  %v1765_v24 = vadd.f32 %v4086_v59, %v4006_v10 }
 0x368   :  { %v1871_v35 = vadd.f32 %v1870_v16, %v1742_v62  ;;  %v2363_v16 = vadd.f32 %v2362_v41, %v2316_v9  ;;  %v2122_v62 = vpop.permute.xlu0 %2121  ;;  %v2127_v27 = vpop.permute.xlu1 %2126  ;;  %v1767_v59 = vadd.f32 %v4106_v29, %v4011_v47 }
 0x369   :  { %v2317_v13 = vmul.f32 %v2092_v60, %v1981_v11  ;;  %v1990_v43 = vmax.f32 %v4229_v42, 0.0 }
 0x36a   :  { %v1983_v6 = vmax.f32 %v1871_v35, 0.0  ;;  %v1746_v54 = vpop.f32.mrf.mxu0 }
 0x36b   :  { %v4254_v36 = vpop.f32.mrf.mxu2  ;;  %v1747_v33 = vadd.f32 %v1746_v54, %v3970_v5  ;;  %v2364_v21 = vadd.f32 %v2363_v16, %v2317_v13  ;;  %v2812_v5 = vld [vmem:[%s4366_s5 + $0x104] sm:$0xf] }
 0x36c   :  { %v2319_v23 = vmul.f32 %v2102_v48, %v1983_v6  ;;  %v2688_v48 = vld [vmem:[%s4366_s5 + $0x108] sm:$0xf0] }
 0x36d   :  { %v2365_v60 = vadd.f32 %v2364_v21, %v2318_v46 }
 0x36e   :  { %v1890_v53 = vpop.f32.mrf.mxu3 }
 0x36f   :  { %v4252_v15 = vadd.f32 %v1890_v53, %v1762_v45  ;;  %v1873_v31 = vpop.f32.mrf.mxu1  ;;  %v1986_v45 = vmax.f32 %v4170_v12, 0.0  ;;  %v2366_v41 = vadd.f32 %v2365_v60, %v2319_v23  ;;  %v1988_v12 = vmax.f32 %v4202_v28, 0.0 }
 0x370   :  { %v1874_v57 = vadd.f32 %v1873_v31, %v1745_v1  ;;  %v1987_v1 = vmax.f32 %v4192_v37, 0.0  ;;  %v1989_v31 = vmax.f32 %v4220_v51, 0.0  ;;  %v2137_v7 = vpop.permute.xlu0 %2136  ;;  %v2142_v13 = vpop.permute.xlu1 %2141  ;;  %v1770_v28 = vadd.f32 %v4120_v55, %v4028_v8  ;;  %v2696_v8 = vld [vmem:[%s4366_s5 + $0x118] sm:$0xf0] }
 0x371   :  { %v2322_v11 = vmul.f32 %v2117_v61, %v1986_v45  ;;  %v2324_v9 = vmul.f32 %v2127_v27, %v1988_v12  ;;  %v1991_v29 = vmax.f32 %v4252_v15, 0.0  ;;  %v2326_v54 = vmul.f32 %v2137_v7, %v1990_v43  ;;  %v2814_v15 = vld [vmem:[%s4366_s5 + $0x114] sm:$0xf] }
 0x372   :  { %1843 = vmatmul.bf16.gmra.mxu2 %v2743_v50  ;;  %v1984_v44 = vmax.f32 %v1874_v57, 0.0  ;;  %v2691_v50 = vor.u32 %v2812_v5, %v2688_v48  ;;  %v1775_v48 = vadd.f32 %v4160_v18, %v4034_v20  ;;  %v1780_v43 = vadd.f32 %v4196_v2, %v4046_v63 }
 0x373   :  { %1932 = vmatmul.bf16.gmra.mxu3 %v2683_v34  ;;  %v1789_v5 = vpop.f32.mrf.mxu2 }
 0x374   :  { %v2320_v14 = vmul.f32 %v2107_v40, %v1984_v44  ;;  %v2132_v40 = vpop.permute.xlu2 %2131 }
 0x375   :  { %v2325_v47 = vmul.f32 %v2132_v40, %v1989_v31 }
 0x376   :  { %v1893_v58 = vpop.f32.mrf.mxu3  ;;  %v2367_v56 = vadd.f32 %v2366_v41, %v2320_v14  ;;  %v2699_v41 = vor.u32 %v2814_v15, %v2696_v8  ;;  %v1787_v8 = vadd.f32 %v4254_v36, %v4060_v32  ;;  %v2822_v32 = vld [vmem:[%s4366_s5 + $0x154] sm:$0xf]  ;;  %v2728_v36 = vld [vmem:[%s4366_s5 + $0x158] sm:$0xf0] }
 0x377   :  { %v1894_v26 = vadd.f32 %v1893_v58, %v1765_v24  ;;  %v1875_v30 = vpop.f32.mrf.mxu1  ;;  %v2327_v24 = vmul.f32 %v2142_v13, %v1991_v29 }
 0x378   :  { %v1876_v38 = vadd.f32 %v1875_v30, %v1747_v33  ;;  %v2157_v55 = vpop.permute.xlu1 %2156 }
 0x379   :  { %v1992_v61 = vmax.f32 %v1894_v26, 0.0  ;;  %v1772_v26 = vadd.f32 %v4136_v39, %v4032_v19  ;;  %v2816_v39 = vld [vmem:[%s4366_s5 + $0x124] sm:$0xf] }
 0x37a   :  { %v1985_v52 = vmax.f32 %v1876_v38, 0.0 }
 0x37c   :  { %v2321_v10 = vmul.f32 %v2112_v17, %v1985_v52  ;;  %v2323_v17 = vmul.f32 %v2122_v62, %v1987_v1  ;;  %v2147_v44 = vpop.permute.xlu2 %2146  ;;  %v2152_v62 = vpop.permute.xlu0 %2151 }
 0x37d   :  { %v2328_v42 = vmul.f32 %v2147_v44, %v1992_v61  ;;  %v1782_v61 = vadd.f32 %v4218_v22, %v4054_v3  ;;  %v2820_v3 = vld [vmem:[%s4366_s5 + $0x144] sm:$0xf]  ;;  %v2720_v22 = vld [vmem:[%s4366_s5 + $0x148] sm:$0xf0] }
 0x37e   :  { %v2368_v35 = vadd.f32 %v2367_v56, %v2321_v10  ;;  %v1895_v53 = vpop.f32.mrf.mxu3 }
 0x37f   :  { %v1896_v37 = vadd.f32 %v1895_v53, %v1767_v59  ;;  %v2704_v53 = vld [vmem:[%s4366_s5 + $0x128] sm:$0xf0] }
 0x380   :  { %v2369_v34 = vadd.f32 %v2368_v35, %v2322_v11  ;;  %v2707_v31 = vor.u32 %v2816_v39, %v2704_v53  ;;  %v2172_v7 = vpop.permute.xlu1 %2171  ;;  %v2731_v39 = vor.u32 %v2822_v32, %v2728_v36 }
 0x381   :  { %v1993_v33 = vmax.f32 %v1896_v37, 0.0  ;;  %v1777_v37 = vadd.f32 %v4172_v0, %v4036_v25  ;;  %v2818_v25 = vld [vmem:[%s4366_s5 + $0x134] sm:$0xf]  ;;  %v2712_v0 = vld [vmem:[%s4366_s5 + $0x138] sm:$0xf0] }
 0x382   :  { %v2370_v57 = vadd.f32 %v2369_v34, %v2323_v17  ;;  %v1791_v17 = vpop.f32.mrf.mxu2 }
 0x383   :  { %1937 = vmatmul.bf16.gmra.mxu3 %v2691_v50  ;;  %v2329_v30 = vmul.f32 %v2152_v62, %v1993_v33 }
 0x384   :  { %v2371_v6 = vadd.f32 %v2370_v57, %v2324_v9  ;;  %v2162_v56 = vpop.permute.xlu2 %2161  ;;  %v2167_v35 = vpop.permute.xlu0 %2166 }
 0x386   :  { %v2372_v16 = vadd.f32 %v2371_v6, %v2325_v47  ;;  %v1898_v46 = vpop.f32.mrf.mxu3 }
 0x387   :  { %v1899_v51 = vadd.f32 %v1898_v46, %v1770_v28  ;;  %v2715_v46 = vor.u32 %v2818_v25, %v2712_v0 }
 0x388   :  { %v2373_v21 = vadd.f32 %v2372_v16, %v2326_v54 }
 0x389   :  { %v1994_v58 = vmax.f32 %v1899_v51, 0.0 }
 0x38a   :  { %v2374_v23 = vadd.f32 %v2373_v21, %v2327_v24  ;;  %v1794_v29 = vpop.f32.mrf.mxu2  ;;  %v1785_v21 = vadd.f32 %v4232_v49, %v4056_v4 }
 0x38b   :  { %v2330_v38 = vmul.f32 %v2157_v55, %v1994_v58 }
 0x38c   :  { %v2375_v60 = vadd.f32 %v2374_v23, %v2328_v42  ;;  %v2177_v28 = vpop.permute.xlu2 %2176  ;;  %v2182_v44 = vpop.permute.xlu0 %2181 }
 0x38e   :  { %v2376_v14 = vadd.f32 %v2375_v60, %v2329_v30  ;;  %v1900_v27 = vpop.f32.mrf.mxu3  ;;  %v2187_v30 = vpop.permute.xlu1 %2186 }
 0x38f   :  { %v1901_v45 = vadd.f32 %v1900_v27, %v1772_v26  ;;  %v2723_v26 = vor.u32 %v2820_v3, %v2720_v22 }
 0x390   :  { %v2377_v52 = vadd.f32 %v2376_v14, %v2330_v38 }
 0x391   :  { %v1995_v1 = vmax.f32 %v1901_v45, 0.0  ;;  %v4392_v45 = vld [vmem:[#allocation3_spill] sm:$0xff] }
 0x392   :  { %v1796_v24 = vpop.f32.mrf.mxu2 }
 0x393   :  { %v2331_v10 = vmul.f32 %v2162_v56, %v1995_v1  ;;  %1942 = vmatmul.bf16.gmra.mxu3 %v2699_v41  ;;  %v1790_v41 = vadd.f32 %v1789_v5, %v4392_v45 }
 0x394   :  { %v2192_v38 = vpop.permute.xlu2 %2191 }
 0x395   :  { %v2378_v59 = vadd.f32 %v2377_v52, %v2331_v10 }
 0x396   :  { %v1903_v40 = vpop.f32.mrf.mxu3 }
 0x397   :  { %v1904_v11 = vadd.f32 %v1903_v40, %v1775_v48 }
 0x399   :  { %v1996_v12 = vmax.f32 %v1904_v11, 0.0  ;;  %v4393_v11 = vld [vmem:[#allocation4_spill] sm:$0xff] }
 0x39a   :  { %v1799_v15 = vpop.f32.mrf.mxu2 }
 0x39b   :  { %v2332_v19 = vmul.f32 %v2167_v35, %v1996_v12  ;;  %v1792_v12 = vadd.f32 %v1791_v17, %v4393_v11  ;;  %v2824_v17 = vld [vmem:[%s4366_s5 + $0x164] sm:$0xf] }
 0x39d   :  { %v2379_v50 = vadd.f32 %v2378_v59, %v2332_v19  ;;  %v2197_v59 = vpop.permute.xlu0 %2196 }
 0x39e   :  { %v1905_v20 = vpop.f32.mrf.mxu3 }
 0x39f   :  { %v1906_v18 = vadd.f32 %v1905_v20, %v1777_v37 }
 0x3a1   :  { %v1997_v34 = vmax.f32 %v1906_v18, 0.0  ;;  %v4394_v18 = vld [vmem:[#allocation5_spill] sm:$0xff] }
 0x3a2   :  { %v1801_v1 = vpop.f32.mrf.mxu2 }
 0x3a3   :  { %v2333_v9 = vmul.f32 %v2172_v7, %v1997_v34  ;;  %1947 = vmatmul.bf16.gmra.mxu3 %v2707_v31  ;;  %v1795_v31 = vadd.f32 %v1794_v29, %v4394_v18 }
 0x3a5   :  { %v2380_v57 = vadd.f32 %v2379_v50, %v2333_v9  ;;  %v2202_v50 = vpop.permute.xlu1 %2201 }
 0x3a6   :  { %v1908_v13 = vpop.f32.mrf.mxu3 }
 0x3a7   :  { %v1909_v47 = vadd.f32 %v1908_v13, %v1780_v43 }
 0x3a9   :  { %v1998_v6 = vmax.f32 %v1909_v47, 0.0 }
 0x3aa   :  { %v1804_v53 = vpop.f32.mrf.mxu2 }
 0x3ab   :  { %v2334_v54 = vmul.f32 %v2177_v28, %v1998_v6  ;;  %v2736_v6 = vld [vmem:[%s4366_s5 + $0x168] sm:$0xf0]  ;;  %v4395_v28 = vld [vmem:[#allocation6_spill] sm:$0xff] }
 0x3ad   :  { %v2381_v16 = vadd.f32 %v2380_v57, %v2334_v54  ;;  %v2207_v57 = vpop.permute.xlu2 %2206  ;;  %v1797_v54 = vadd.f32 %v1796_v24, %v4395_v28  ;;  %v2826_v24 = vld [vmem:[%s4366_s5 + $0x174] sm:$0xf] }
 0x3ae   :  { %v1910_v63 = vpop.f32.mrf.mxu3 }
 0x3af   :  { %v1911_v2 = vadd.f32 %v1910_v63, %v1782_v61  ;;  %v2739_v61 = vor.u32 %v2824_v17, %v2736_v6  ;;  %v2212_v63 = vpop.permute.xlu0 %2211 }
 0x3b1   :  { %v1999_v51 = vmax.f32 %v1911_v2, 0.0 }
 0x3b2   :  { %v1806_v13 = vpop.f32.mrf.mxu2 }
 0x3b3   :  { %v2335_v33 = vmul.f32 %v2182_v44, %v1999_v51  ;;  %1952 = vmatmul.bf16.gmra.mxu3 %v2715_v46  ;;  %v4396_v51 = vld [vmem:[#allocation7_spill] sm:$0xff] }
 0x3b4   :  { %v1800_v44 = vadd.f32 %v1799_v15, %v4396_v51  ;;  %v4403_v51 = vld [vmem:[#allocation14_spill] sm:$0xff] }
 0x3b5   :  { %v2382_v42 = vadd.f32 %v2381_v16, %v2335_v33 }
 0x3b6   :  { %v1913_v23 = vpop.f32.mrf.mxu3 }
 0x3b7   :  { %v1914_v58 = vadd.f32 %v1913_v23, %v1785_v21 }
 0x3b9   :  { %v2000_v62 = vmax.f32 %v1914_v58, 0.0  ;;  %v2217_v58 = vpop.permute.xlu1 %2216 }
 0x3ba   :  { %v1809_v46 = vpop.f32.mrf.mxu2 }
 0x3bb   :  { %v2336_v60 = vmul.f32 %v2187_v30, %v2000_v62  ;;  %v2744_v30 = vld [vmem:[%s4366_s5 + $0x178] sm:$0xf0] }
 0x3bd   :  { %v2383_v55 = vadd.f32 %v2382_v42, %v2336_v60  ;;  %v4397_v60 = vld [vmem:[#allocation8_spill] sm:$0xff] }
 0x3be   :  { %v1915_v4 = vpop.f32.mrf.mxu3  ;;  %v1802_v3 = vadd.f32 %v1801_v1, %v4397_v60 }
 0x3bf   :  { %v1916_v49 = vadd.f32 %v1915_v4, %v1787_v8  ;;  %v2747_v4 = vor.u32 %v2826_v24, %v2744_v30  ;;  %v4404_v30 = vld [vmem:[#allocation15_spill] sm:$0xff] }
 0x3c1   :  { %v2001_v14 = vmax.f32 %v1916_v49, 0.0 }
 0x3c2   :  { %v1811_v8 = vpop.f32.mrf.mxu2 }
 0x3c3   :  { %v2337_v27 = vmul.f32 %v2192_v38, %v2001_v14  ;;  %1957 = vmatmul.bf16.gmra.mxu3 %v2723_v26  ;;  %v2222_v26 = vpop.permute.xlu2 %2221  ;;  %v4398_v38 = vld [vmem:[#allocation9_spill] sm:$0xff] }
 0x3c5   :  { %v2384_v52 = vadd.f32 %v2383_v55, %v2337_v27  ;;  %v1805_v27 = vadd.f32 %v1804_v53, %v4398_v38 }
 0x3c6   :  { %v1918_v56 = vpop.f32.mrf.mxu3 }
 0x3c7   :  { %v1919_v10 = vadd.f32 %v1918_v56, %v1790_v41 }
 0x3c9   :  { %v2002_v48 = vmax.f32 %v1919_v10, 0.0 }
 0x3ca   :  { %v1814_v56 = vpop.f32.mrf.mxu2 }
 0x3cb   :  { %v2338_v40 = vmul.f32 %v2197_v59, %v2002_v48  ;;  %v2227_v48 = vpop.permute.xlu0 %2226 }
 0x3cd   :  { %v2385_v35 = vadd.f32 %v2384_v52, %v2338_v40  ;;  %v4399_v40 = vld [vmem:[#allocation10_spill] sm:$0xff] }
 0x3ce   :  { %v1920_v19 = vpop.f32.mrf.mxu3  ;;  %v1807_v1 = vadd.f32 %v1806_v13, %v4399_v40 }
 0x3cf   :  { %v1921_v5 = vadd.f32 %v1920_v19, %v1792_v12 }
 0x3d1   :  { %v2003_v37 = vmax.f32 %v1921_v5, 0.0 }
 0x3d2   :  { %v1816_v19 = vpop.f32.mrf.mxu2 }
 0x3d3   :  { %v2339_v20 = vmul.f32 %v2202_v50, %v2003_v37  ;;  %1962 = vmatmul.bf16.gmra.mxu3 %v2731_v39  ;;  %v4400_v39 = vld [vmem:[#allocation11_spill] sm:$0xff]  ;;  %v2242_v6 = vpop.permute.xlu0 %2241 }
 0x3d4   :  { %v1810_v37 = vadd.f32 %v1809_v46, %v4400_v39 }
 0x3d5   :  { %v2386_v34 = vadd.f32 %v2385_v35, %v2339_v20  ;;  %v2232_v35 = vpop.permute.xlu1 %2231 }
 0x3d6   :  { %v1923_v7 = vpop.f32.mrf.mxu3 }
 0x3d7   :  { %v1924_v9 = vadd.f32 %v1923_v7, %v1795_v31  ;;  %v2237_v31 = vpop.permute.xlu2 %2236 }
 0x3d9   :  { %v2004_v43 = vmax.f32 %v1924_v9, 0.0  ;;  %v4401_v9 = vld [vmem:[#allocation12_spill] sm:$0xff] }
 0x3da   :  { %v1819_v7 = vpop.f32.mrf.mxu2 }
 0x3db   :  { %v2340_v47 = vmul.f32 %v2207_v57, %v2004_v43  ;;  %v1812_v43 = vadd.f32 %v1811_v8, %v4401_v9  ;;  %v1820_v60 = vadd.f32 %v1819_v7, %v4404_v30  ;;  %v4413_v30 = vld [vmem:[#allocation24_spill] sm:$0xff] }
 0x3dd   :  { %v2387_v25 = vadd.f32 %v2386_v34, %v2340_v47 }
 0x3de   :  { %v1925_v0 = vpop.f32.mrf.mxu3 }
 0x3df   :  { %v1926_v29 = vadd.f32 %v1925_v0, %v1797_v54  ;;  %v4402_v54 = vld [vmem:[#allocation13_spill] sm:$0xff] }
 0x3e1   :  { %v2005_v16 = vmax.f32 %v1926_v29, 0.0 }
 0x3e2   :  { %v1821_v29 = vpop.f32.mrf.mxu2 }
 0x3e3   :  { %v2341_v2 = vmul.f32 %v2212_v63, %v2005_v16  ;;  %1967 = vmatmul.bf16.gmra.mxu3 %v2739_v61 }
 0x3e5   :  { %v2388_v33 = vadd.f32 %v2387_v25, %v2341_v2  ;;  %v1815_v25 = vadd.f32 %v1814_v56, %v4402_v54  ;;  %v2247_v2 = vpop.permute.xlu1 %2246 }
 0x3e6   :  { %v1928_v21 = vpop.f32.mrf.mxu3 }
 0x3e7   :  { %v1929_v42 = vadd.f32 %v1928_v21, %v1800_v44  ;;  %v1817_v44 = vadd.f32 %v1816_v19, %v4403_v51 }
 0x3e9   :  { %v2006_v23 = vmax.f32 %v1929_v42, 0.0 }
 0x3eb   :  { %v2342_v62 = vmul.f32 %v2217_v58, %v2006_v23  ;;  %v1824_v23 = vpop.f32.mrf.mxu2 }
 0x3ed   :  { %v2389_v22 = vadd.f32 %v2388_v33, %v2342_v62  ;;  %v2252_v62 = vpop.permute.xlu2 %2251 }
 0x3ee   :  { %v1930_v55 = vpop.f32.mrf.mxu3 }
 0x3ef   :  { %v1931_v15 = vadd.f32 %v1930_v55, %v1802_v3 }
 0x3f1   :  { %v2007_v49 = vmax.f32 %v1931_v15, 0.0  ;;  %v2257_v15 = vpop.permute.xlu0 %2256 }
 0x3f3   :  { %v2343_v14 = vmul.f32 %v2222_v26, %v2007_v49  ;;  %1972 = vmatmul.bf16.gmra.mxu3 %v2747_v4  ;;  %v1826_v4 = vpop.f32.mrf.mxu2 }
 0x3f5   :  { %v2390_v45 = vadd.f32 %v2389_v22, %v2343_v14 }
 0x3f6   :  { %v1933_v41 = vpop.f32.mrf.mxu3 }
 0x3f7   :  { %v1934_v52 = vadd.f32 %v1933_v41, %v1805_v27 }
 0x3f9   :  { %v2008_v10 = vmax.f32 %v1934_v52, 0.0 }
 0x3fb   :  { %v2344_v59 = vmul.f32 %v2227_v48, %v2008_v10  ;;  %v1829_v38 = vpop.f32.mrf.mxu2 }
 0x3fd   :  { %v2391_v32 = vadd.f32 %v2390_v45, %v2344_v59 }
 0x3fe   :  { %v1935_v36 = vpop.f32.mrf.mxu3 }
 0x3ff   :  { %v1936_v11 = vadd.f32 %v1935_v36, %v1807_v1  ;;  %v4405_v36 = vld [vmem:[#allocation16_spill] sm:$0xff] }
 0x401   :  { %v2009_v12 = vmax.f32 %v1936_v11, 0.0  ;;  %v1822_v11 = vadd.f32 %v1821_v29, %v4405_v36 }
 0x403   :  { %v2345_v5 = vmul.f32 %v2232_v35, %v2009_v12  ;;  %v1831_v45 = vpop.f32.mrf.mxu2  ;;  %v2267_v12 = vpop.permute.xlu2 %2266  ;;  %v4406_v35 = vld [vmem:[#allocation17_spill] sm:$0xff] }
 0x404   :  { %v1825_v19 = vadd.f32 %v1824_v23, %v4406_v35 }
 0x405   :  { %v2392_v50 = vadd.f32 %v2391_v32, %v2345_v5  ;;  %v2262_v32 = vpop.permute.xlu1 %2261 }
 0x406   :  { %v1938_v53 = vpop.f32.mrf.mxu3 }
 0x407   :  { %v1939_v20 = vadd.f32 %v1938_v53, %v1810_v37 }
 0x409   :  { %v2010_v18 = vmax.f32 %v1939_v20, 0.0 }
 0x40b   :  { %v2346_v34 = vmul.f32 %v2237_v31, %v2010_v18  ;;  %v1834_v56 = vpop.f32.mrf.mxu2  ;;  %v2272_v18 = vpop.permute.xlu0 %2271  ;;  %v4408_v31 = vld [vmem:[#allocation19_spill] sm:$0xff] }
 0x40c   :  { %v2282_v29 = vpop.permute.xlu2 %2281 }
 0x40d   :  { %v2393_v57 = vadd.f32 %v2392_v50, %v2346_v34  ;;  %v4407_v50 = vld [vmem:[#allocation18_spill] sm:$0xff]  ;;  %v1830_v34 = vadd.f32 %v1829_v38, %v4408_v31 }
 0x40e   :  { %v1940_v13 = vpop.f32.mrf.mxu3  ;;  %v1827_v53 = vadd.f32 %v1826_v4, %v4407_v50  ;;  %v4414_v4 = vld [vmem:[#allocation25_spill] sm:$0xff] }
 0x40f   :  { %v1941_v47 = vadd.f32 %v1940_v13, %v1812_v43  ;;  %v2277_v43 = vpop.permute.xlu1 %2276 }
 0x411   :  { %v2011_v17 = vmax.f32 %v1941_v47, 0.0 }
 0x413   :  { %v2347_v28 = vmul.f32 %v2242_v6, %v2011_v17  ;;  %v1836_v48 = vpop.f32.mrf.mxu2  ;;  %v4410_v6 = vld [vmem:[#allocation21_spill] sm:$0xff] }
 0x415   :  { %v2394_v0 = vadd.f32 %v2393_v57, %v2347_v28  ;;  %v4409_v57 = vld [vmem:[#allocation20_spill] sm:$0xff]  ;;  %v1835_v28 = vadd.f32 %v1834_v56, %v4410_v6 }
 0x416   :  { %v1943_v61 = vpop.f32.mrf.mxu3  ;;  %v1832_v13 = vadd.f32 %v1831_v45, %v4409_v57 }
 0x417   :  { %v1944_v16 = vadd.f32 %v1943_v61, %v1815_v25 }
 0x419   :  { %v2012_v63 = vmax.f32 %v1944_v16, 0.0  ;;  %v4411_v16 = vld [vmem:[#allocation22_spill] sm:$0xff] }
 0x41b   :  { %v2348_v46 = vmul.f32 %v2247_v2, %v2012_v63  ;;  %v1839_v40 = vpop.f32.mrf.mxu2  ;;  %v1837_v63 = vadd.f32 %v1836_v48, %v4411_v16  ;;  %v2297_v48 = vpop.permute.xlu2 %2296 }
 0x41d   :  { %v2395_v33 = vadd.f32 %v2394_v0, %v2348_v46 }
 0x41e   :  { %v1945_v21 = vpop.f32.mrf.mxu3 }
 0x41f   :  { %v1946_v42 = vadd.f32 %v1945_v21, %v1817_v44  ;;  %v4412_v44 = vld [vmem:[#allocation23_spill] sm:$0xff] }
 0x421   :  { %v2013_v58 = vmax.f32 %v1946_v42, 0.0 }
 0x423   :  { %v2349_v24 = vmul.f32 %v2252_v62, %v2013_v58  ;;  %v1841_v39 = vpop.f32.mrf.mxu2 }
 0x425   :  { %v2396_v3 = vadd.f32 %v2395_v33, %v2349_v24  ;;  %v1840_v33 = vadd.f32 %v1839_v40, %v4412_v44  ;;  %v2287_v24 = vpop.permute.xlu0 %2286 }
 0x426   :  { %v1948_v22 = vpop.f32.mrf.mxu3 }
 0x427   :  { %v1949_v8 = vadd.f32 %v1948_v22, %v1820_v60  ;;  %v1842_v60 = vadd.f32 %v1841_v39, %v4413_v30 }
 0x429   :  { %v2014_v55 = vmax.f32 %v1949_v8, 0.0 }
 0x42b   :  { %v2350_v49 = vmul.f32 %v2257_v15, %v2014_v55  ;;  %v1844_v21 = vpop.f32.mrf.mxu2  ;;  %v2292_v15 = vpop.permute.xlu1 %2291 }
 0x42d   :  { %v2397_v26 = vadd.f32 %v2396_v3, %v2350_v49  ;;  %v1845_v49 = vadd.f32 %v1844_v21, %v4414_v4  ;;  %v2302_v35 = vpop.permute.xlu0 %2301 }
 0x42e   :  { %v1950_v14 = vpop.f32.mrf.mxu3 }
 0x42f   :  { %v1951_v5 = vadd.f32 %v1950_v14, %v1822_v11 }
 0x431   :  { %v2015_v7 = vmax.f32 %v1951_v5, 0.0 }
 0x433   :  { %v2351_v54 = vmul.f32 %v2262_v32, %v2015_v7  ;;  %v1846_v32 = vpop.f32.mrf.mxu2  ;;  %v2307_v50 = vpop.permute.xlu1 %2306 }
 0x435   :  { %v2398_v42 = vadd.f32 %v2397_v26, %v2351_v54  ;;  %v2419_v54 = vpop.permute.xlu0 %2418 }
 0x436   :  { %v1953_v27 = vpop.f32.mrf.mxu3 }
 0x437   :  { %v1954_v20 = vadd.f32 %v1953_v27, %v1825_v19  ;;  %v4415_v19 = vld [vmem:[#allocation26_spill] sm:$0xff] }
 0x438   :  { %v1847_v5 = vadd.f32 %v1846_v32, %v4415_v19 }
 0x439   :  { %v2016_v47 = vmax.f32 %v1954_v20, 0.0 }
 0x43b   :  { %v2352_v2 = vmul.f32 %v2267_v12, %v2016_v47 }
 0x43d   :  { %v2399_v3 = vadd.f32 %v2398_v42, %v2352_v2 }
 0x43e   :  { %v1955_v41 = vpop.f32.mrf.mxu3 }
 0x43f   :  { %v1956_v9 = vadd.f32 %v1955_v41, %v1827_v53 }
 0x441   :  { %v2017_v25 = vmax.f32 %v1956_v9, 0.0  ;;  %v2312_v9 = vpop.permute.xlu2 %2311 }
 0x443   :  { %v2353_v23 = vmul.f32 %v2272_v18, %v2017_v25 }
 0x445   :  { %v2400_v14 = vadd.f32 %v2399_v3, %v2353_v23 }
 0x446   :  { %v1958_v52 = vpop.f32.mrf.mxu3 }
 0x447   :  { %v1959_v17 = vadd.f32 %v1958_v52, %v1830_v34 }
 0x449   :  { %v2018_v46 = vmax.f32 %v1959_v17, 0.0 }
 0x44b   :  { %v2354_v22 = vmul.f32 %v2277_v43, %v2018_v46 }
 0x44d   :  { %v2401_v52 = vadd.f32 %v2400_v14, %v2354_v22 }
 0x44e   :  { %v1960_v10 = vpop.f32.mrf.mxu3 }
 0x44f   :  { %v1961_v0 = vadd.f32 %v1960_v10, %v1832_v13 }
 0x451   :  { %v2019_v58 = vmax.f32 %v1961_v0, 0.0  ;;  %v2421_v0 = vperm.slane %v2419_v54, 0 }
 0x453   :  { %v2355_v38 = vmul.f32 %v2282_v29, %v2019_v58 }
 0x456   :  { %v1963_v59 = vpop.f32.mrf.mxu3 }
 0x457   :  { %v1964_v51 = vadd.f32 %v1963_v59, %v1835_v28  ;;  %v2402_v59 = vadd.f32 %v2401_v52, %v2355_v38 }
 0x459   :  { %v2020_v8 = vmax.f32 %v1964_v51, 0.0 }
 0x45b   :  { %v2356_v26 = vmul.f32 %v2287_v24, %v2020_v8 }
 0x45d   :  { %v2403_v36 = vadd.f32 %v2402_v59, %v2356_v26 }
 0x45e   :  { %v1965_v1 = vpop.f32.mrf.mxu3 }
 0x45f   :  { %v1966_v62 = vadd.f32 %v1965_v1, %v1837_v63 }
 0x461   :  { %v2021_v27 = vmax.f32 %v1966_v62, 0.0 }
 0x463   :  { %v2357_v40 = vmul.f32 %v2292_v15, %v2021_v27 }
 0x465   :  { %v2404_v39 = vadd.f32 %v2403_v36, %v2357_v40 }
 0x466   :  { %v1968_v37 = vpop.f32.mrf.mxu3 }
 0x467   :  { %v1969_v55 = vadd.f32 %v1968_v37, %v1840_v33 }
 0x469   :  { %v2022_v56 = vmax.f32 %v1969_v55, 0.0 }
 0x46b   :  { %v2358_v11 = vmul.f32 %v2297_v48, %v2022_v56 }
 0x46d   :  { %v2405_v20 = vadd.f32 %v2404_v39, %v2358_v11 }
 0x46e   :  { %v1970_v61 = vpop.f32.mrf.mxu3 }
 0x46f   :  { %v1971_v45 = vadd.f32 %v1970_v61, %v1842_v60 }
 0x471   :  { %v2023_v1 = vmax.f32 %v1971_v45, 0.0 }
 0x473   :  { %v2359_v37 = vmul.f32 %v2302_v35, %v2023_v1 }
 0x475   :  { %v2406_v34 = vadd.f32 %v2405_v20, %v2359_v37 }
 0x476   :  { %v1973_v41 = vpop.f32.mrf.mxu3 }
 0x477   :  { %v1974_v10 = vadd.f32 %v1973_v41, %v1845_v49 }
 0x479   :  { %v2024_v12 = vmax.f32 %v1974_v10, 0.0 }
 0x47b   :  { %v2360_v18 = vmul.f32 %v2307_v50, %v2024_v12 }
 0x47d   :  { %v2407_v43 = vadd.f32 %v2406_v34, %v2360_v18 }
 0x47e   :  { %v1975_v53 = vpop.f32.mrf.mxu3 }
 0x47f   :  { %v1976_v31 = vadd.f32 %v1975_v53, %v1847_v5 }
 0x481   :  { %v2025_v7 = vmax.f32 %v1976_v31, 0.0 }
 0x483   :  { %v2361_v57 = vmul.f32 %v2312_v9, %v2025_v7 }
 0x485   :  { %v2408_v13 = vadd.f32 %v2407_v43, %v2361_v57 }
 0x487   :  { %v2409_v47 = vrot.slane %v2408_v13, 4 }
 0x489   :  { %v2410_v17 = vadd.f32 %v2409_v47, %v2408_v13 }
 0x48b   :  { %v2411_v6 = vrot.slane %v2410_v17, 2 }
 0x48d   :  { %v2412_v28 = vadd.f32 %v2411_v6, %v2410_v17 }
 0x48f   :  { %v2413_v25 = vrot.slane %v2412_v28, 1 }
 0x491   :  { %v2414_v29 = vadd.f32 %v2413_v25, %v2412_v28 }
 0x493   :  { %v2422_v61 = vadd.f32 %v2421_v0, %v2414_v29 }
 0x495   :  { %2423 = vst [vmem:[%s4367_s9] sm:$0x1] %v2422_v61 }

</bundles_post_ra>
